<compile_context>
chip_gen: v7x
topology: tpu7x:2x2x1
jax: 0.10.0
libtpu: 0.0.40
codegen_flags: <defaults>
</compile_context>

<pallas_src>
import functools

import jax
import jax.numpy as jnp
from jax.experimental import pallas as pl
from jax.experimental.pallas import tpu as pltpu


# ----------------------------------------------------------------------------
# Fused kernel: whole adaption_layer forward, single invocation, VMEM resident.
# Activations are passed as (B*L, D) 2-D slabs; weights as (in, out) so y = x @ W + b.
# ----------------------------------------------------------------------------
def _fused_adaption_kernel(*refs, batch, seq, num_heads):
    (doc_ref, ent_ref, mb_doc_ref, mb_ent_ref, ent_mask_ref,
     w_att_win, w_att_bin, w_att_wo, w_att_bo,
     w_so_w, w_so_b, w_so_g, w_so_be,
     e_att_win, e_att_bin, e_att_wo, e_att_bo,
     e_so_w, e_so_b, e_so_g, e_so_be,
     iw_w, iw_b, ie_w, ie_b,
     fw_w, fw_b, fw_g, fw_be,
     fe_w, fe_b, fe_g, fe_be,
     out_word_ref, out_ent_ref) = refs

    B, L, H = batch, seq, num_heads

    def mha(x2, mbias_z, w_in, b_in, wo, bo):
        """Self multi-head attention (eval mode, float additive key mask).

        x2: (B*L, E).  One fused QKV projection with batch folded into M, then a single
        batched-over-(head, batch) contraction for scores and context.
        """
        E = x2.shape[-1]
        hd = E // H
        scale = 1.0 / float(hd) ** 0.5

        qkv = jnp.dot(x2, w_in, preferred_element_type=jnp.float32) + b_in   # (B*L, 3E)
        qkv3 = qkv.reshape(B, L, 3 * E)

        def split_heads(off):
            # (B, L, E)-slice -> (H*B, L, hd), head-major; transpose-free (leading concat
            # of static lane slices only).
            return jnp.concatenate(
                [qkv3[:, :, off + h * hd: off + (h + 1) * hd] for h in range(H)],
                axis=0)

        q = split_heads(0) * scale
        k = split_heads(E)
        v = split_heads(2 * E)

        # One batched matmul over all heads & batches; k is contracted on its feature
        # axis directly (no explicit k.T materialization).
        s = jnp.einsum('zqd,zkd->zqk', q, k,
                       preferred_element_type=jnp.float32) + mbias_z          # (H*B, L, L)
        s = s - jnp.max(s, axis=-1, keepdims=True)
        p = jnp.exp(s)
        p = p * pl.reciprocal(jnp.sum(p, axis=-1, keepdims=True), approx=True)
        ctx = jnp.einsum('zqk,zkd->zqd', p, v,
                         preferred_element_type=jnp.float32)                  # (H*B, L, hd)

        # Merge heads back onto the lane axis -> (B*L, E), then one output projection.
        ctx2 = jnp.concatenate(
            [ctx[h * B:(h + 1) * B].reshape(B * L, hd) for h in range(H)], axis=-1)
        return jnp.dot(ctx2, wo, preferred_element_type=jnp.float32) + bo

    def self_output(h2, res2, w, b, gamma, beta):
        """SelfOutput: LayerNorm(dense(h) + residual); dropout == identity (eval)."""
        y = jnp.dot(h2, w, preferred_element_type=jnp.float32) + b + res2
        mean = jnp.mean(y, axis=-1, keepdims=True)
        c = y - mean
        var = jnp.mean(c * c, axis=-1, keepdims=True)
        return (c * jax.lax.rsqrt(var + 1e-5)) * gamma + beta

    def gelu(x):
        # tanh-approximate GELU (EUP tanh path).
        # TODO(synk): torch F.gelu default is the exact erf GELU; the tanh approximation
        # differs by up to ~1e-3 per element (acceptable for inference).
        c0 = 0.7978845608028654   # sqrt(2/pi)
        return 0.5 * x * (1.0 + jnp.tanh(c0 * (x + 0.044715 * x * x * x)))

    doc2 = doc_ref[...]                          # (B*L, Ew)
    ent2 = ent_ref[...]                          # (B*L, Ee)

    # word branch
    word_attn = mha(doc2, mb_doc_ref[...], w_att_win[...], w_att_bin[...],
                    w_att_wo[...], w_att_bo[...])
    word_attn = self_output(word_attn, doc2, w_so_w[...], w_so_b[...],
                            w_so_g[...], w_so_be[...])

    # entity branch (output zeroed on padded entities, after LayerNorm, as in reference)
    ent_attn = mha(ent2, mb_ent_ref[...], e_att_win[...], e_att_bin[...],
                   e_att_wo[...], e_att_bo[...])
    ent_attn = self_output(ent_attn, ent2, e_so_w[...], e_so_b[...],
                           e_so_g[...], e_so_be[...])
    ent_attn = ent_attn * ent_mask_ref[...]      # (B*L, 1) mask

    # intermediate fusion + gelu
    hidden = gelu(
        jnp.dot(word_attn, iw_w[...], preferred_element_type=jnp.float32) + iw_b[...]
        + jnp.dot(ent_attn, ie_w[...], preferred_element_type=jnp.float32) + ie_b[...])

    # final outputs
    out_word_ref[...] = self_output(hidden, word_attn, fw_w[...], fw_b[...],
                                    fw_g[...], fw_be[...]).astype(out_word_ref.dtype)
    out_ent_ref[...] = self_output(hidden, ent_attn, fe_w[...], fe_b[...],
                                   fe_g[...], fe_be[...]).astype(out_ent_ref.dtype)


# ----------------------------------------------------------------------------
# Wrapper: mask expansion + single pallas_call
# ----------------------------------------------------------------------------
def adaption_layer_forward(params, doc_hidden_states, ent_hidden_states,
                           attention_mask, attention_mask_ent, num_heads):
    B, L, Ew = doc_hidden_states.shape
    Ee = ent_hidden_states.shape[2]
    H = num_heads

    # _attention_mask_expand: ~mask * -10000 key-axis additive bias, laid out as
    # (H*B, 1, L) head-major to match the kernel's (H*B, L, hd) q/k/v layout.
    def mask_bias_z(mask_bool):
        mb = jnp.where(mask_bool, 0.0, -10000.0).astype(jnp.float32)      # (B, L)
        return jnp.broadcast_to(mb[None, :, None, :], (H, B, 1, L)).reshape(H * B, 1, L)

    mb_doc = mask_bias_z(attention_mask)
    mb_ent = mask_bias_z(attention_mask_ent)
    ent_mask_2d = attention_mask_ent.astype(jnp.float32).reshape(B * L, 1)

    doc2 = doc_hidden_states.reshape(B * L, Ew)
    ent2 = ent_hidden_states.reshape(B * L, Ee)

    inputs = (doc2, ent2, mb_doc, mb_ent, ent_mask_2d,
              *params["word_att"], *params["word_so"],
              *params["ent_att"], *params["ent_so"],
              *params["inter_w"], *params["inter_e"],
              *params["final_word"], *params["final_ent"])

    kernel = functools.partial(_fused_adaption_kernel, batch=B, seq=L, num_heads=H)
    out_w, out_e = pl.pallas_call(
        kernel,
        # Single invocation, no grid: the whole (tiny) problem is VMEM-resident and batch
        # is folded into the matmul M dimension.
        out_shape=(jax.ShapeDtypeStruct((B * L, Ew), doc_hidden_states.dtype),
                   jax.ShapeDtypeStruct((B * L, Ee), ent_hidden_states.dtype)),
    )(*inputs)
    return out_w.reshape(B, L, Ew), out_e.reshape(B, L, Ee)


# ----------------------------------------------------------------------------
# Pure-JAX reference (same math, standard softmax) for a sanity check
# ----------------------------------------------------------------------------
def _reference_forward(params, doc, ent, mask, mask_ent, num_heads):
    H = num_heads

    def mha_ref(x, mask_bool, w_in, b_in, wo, bo):
        B, L, E = x.shape
        hd = E // H
        qkv = x @ w_in + b_in

        def split(t):
            return t.reshape(B, L, H, hd).transpose(0, 2, 1, 3)

        q = split(qkv[..., :E]) / jnp.sqrt(float(hd))
        k = split(qkv[..., E:2 * E])
        v = split(qkv[..., 2 * E:])
        bias = jnp.where(mask_bool, 0.0, -10000.0)[:, None, None, :]
        s = jnp.einsum('bhqd,bhkd->bhqk', q, k) + bias
        p = jax.nn.softmax(s, axis=-1)
        ctx = jnp.einsum('bhqk,bhkd->bhqd', p, v).transpose(0, 2, 1, 3).reshape(B, L, E)
        return ctx @ wo + bo

    def so_ref(h, res, w, b, g, be):
        y = h @ w + b + res
        m = jnp.mean(y, axis=-1, keepdims=True)
        v = jnp.mean((y - m) ** 2, axis=-1, keepdims=True)
        return (y - m) / jnp.sqrt(v + 1e-5) * g + be

    def gelu(x):
        c0 = 0.7978845608028654
        return 0.5 * x * (1.0 + jnp.tanh(c0 * (x + 0.044715 * x ** 3)))

    wa = mha_ref(doc, mask, *params["word_att"])
    wa = so_ref(wa, doc, *params["word_so"])
    ea = mha_ref(ent, mask_ent, *params["ent_att"])
    ea = so_ref(ea, ent, *params["ent_so"])
    ea = ea * mask_ent.astype(jnp.float32)[..., None]
    hidden = gelu(wa @ params["inter_w"][0] + params["inter_w"][1]
                  + ea @ params["inter_e"][0] + params["inter_e"][1])
    out_w = so_ref(hidden, wa, *params["final_word"])
    out_e = so_ref(hidden, ea, *params["final_ent"])
    return out_w, out_e


# ----------------------------------------------------------------------------
# Deterministic parameter init (weights stored as (in, out); biases as (1, out))
# ----------------------------------------------------------------------------
def init_params(key, hidden_dim, ent_hidden_dim, kg_intermediate_dim):
    ks = iter(jax.random.split(key, 16))

    def lin(din, dout):
        w = jax.random.normal(next(ks), (din, dout), jnp.float32) * 0.02
        b = jnp.zeros((1, dout), jnp.float32)
        return w, b

    def attn(dim):
        w_in, b_in = lin(dim, 3 * dim)
        wo, bo = lin(dim, dim)
        return (w_in, b_in, wo, bo)

    def selfout(din, dout):
        w, b = lin(din, dout)
        gamma = jnp.ones((1, dout), jnp.float32)
        beta = jnp.zeros((1, dout), jnp.float32)
        return (w, b, gamma, beta)

    return {
        "word_att": attn(hidden_dim),
        "word_so": selfout(hidden_dim, hidden_dim),
        "ent_att": attn(ent_hidden_dim),
        "ent_so": selfout(ent_hidden_dim, ent_hidden_dim),
        "inter_w": lin(hidden_dim, kg_intermediate_dim),
        "inter_e": lin(ent_hidden_dim, kg_intermediate_dim),
        "final_word": selfout(kg_intermediate_dim, hidden_dim),
        "final_ent": selfout(kg_intermediate_dim, ent_hidden_dim),
    }


if __name__ == "__main__":
    B, L = 2, 8                      # word / entity sequences share L for the fusion add
    hidden_dim, ent_hidden_dim = 32, 16
    kg_intermediate_dim, num_heads = 64, 4

    key = jax.random.PRNGKey(0)
    k_doc, k_ent, k_par = jax.random.split(key, 3)
    doc_hidden_states = jax.random.normal(k_doc, (B, L, hidden_dim), jnp.float32)
    ent_hidden_states = jax.random.normal(k_ent, (B, L, ent_hidden_dim), jnp.float32)

    lens_doc = jnp.array([8, 6])
    lens_ent = jnp.array([5, 8])
    attention_mask = jnp.arange(L)[None, :] < lens_doc[:, None]       # bool (B, L)
    attention_mask_ent = jnp.arange(L)[None, :] < lens_ent[:, None]   # bool (B, L)

    params = init_params(k_par, hidden_dim, ent_hidden_dim, kg_intermediate_dim)

    layer_output, layer_output_ent = adaption_layer_forward(
        params, doc_hidden_states, ent_hidden_states,
        attention_mask, attention_mask_ent, num_heads)
    jax.block_until_ready((layer_output, layer_output_ent))

    assert layer_output.shape == (B, L, hidden_dim)
    assert layer_output_ent.shape == (B, L, ent_hidden_dim)

    # Sanity check vs. a pure-JAX mirror (loose tolerance covers the approx reciprocal
    # in the in-kernel softmax and f32 accumulation-order differences).
    ref_w, ref_e = _reference_forward(params, doc_hidden_states, ent_hidden_states,
                                      attention_mask, attention_mask_ent, num_heads)
    assert float(jnp.max(jnp.abs(layer_output - ref_w))) < 5e-2
    assert float(jnp.max(jnp.abs(layer_output_ent - ref_e))) < 5e-2

    print("KERNEL_OK")
</pallas_src>

<mosaic_0001>
module attributes {stable_mosaic.version = 11 : i64} {
  func.func @_fused_adaption_kernel(%arg0: memref<16x32xf32, #tpu.memory_space<vmem>>, %arg1: memref<16x16xf32, #tpu.memory_space<vmem>>, %arg2: memref<8x1x8xf32, #tpu.memory_space<vmem>>, %arg3: memref<8x1x8xf32, #tpu.memory_space<vmem>>, %arg4: memref<16x1xf32, #tpu.memory_space<vmem>>, %arg5: memref<32x96xf32, #tpu.memory_space<vmem>>, %arg6: memref<1x96xf32, #tpu.memory_space<vmem>>, %arg7: memref<32x32xf32, #tpu.memory_space<vmem>>, %arg8: memref<1x32xf32, #tpu.memory_space<vmem>>, %arg9: memref<32x32xf32, #tpu.memory_space<vmem>>, %arg10: memref<1x32xf32, #tpu.memory_space<vmem>>, %arg11: memref<1x32xf32, #tpu.memory_space<vmem>>, %arg12: memref<1x32xf32, #tpu.memory_space<vmem>>, %arg13: memref<16x48xf32, #tpu.memory_space<vmem>>, %arg14: memref<1x48xf32, #tpu.memory_space<vmem>>, %arg15: memref<16x16xf32, #tpu.memory_space<vmem>>, %arg16: memref<1x16xf32, #tpu.memory_space<vmem>>, %arg17: memref<16x16xf32, #tpu.memory_space<vmem>>, %arg18: memref<1x16xf32, #tpu.memory_space<vmem>>, %arg19: memref<1x16xf32, #tpu.memory_space<vmem>>, %arg20: memref<1x16xf32, #tpu.memory_space<vmem>>, %arg21: memref<32x64xf32, #tpu.memory_space<vmem>>, %arg22: memref<1x64xf32, #tpu.memory_space<vmem>>, %arg23: memref<16x64xf32, #tpu.memory_space<vmem>>, %arg24: memref<1x64xf32, #tpu.memory_space<vmem>>, %arg25: memref<64x32xf32, #tpu.memory_space<vmem>>, %arg26: memref<1x32xf32, #tpu.memory_space<vmem>>, %arg27: memref<1x32xf32, #tpu.memory_space<vmem>>, %arg28: memref<1x32xf32, #tpu.memory_space<vmem>>, %arg29: memref<64x16xf32, #tpu.memory_space<vmem>>, %arg30: memref<1x16xf32, #tpu.memory_space<vmem>>, %arg31: memref<1x16xf32, #tpu.memory_space<vmem>>, %arg32: memref<1x16xf32, #tpu.memory_space<vmem>>, %arg33: memref<16x32xf32, #tpu.memory_space<vmem>>, %arg34: memref<16x16xf32, #tpu.memory_space<vmem>>) attributes {dimension_semantics = [], scalar_prefetch = 0 : i64, scratch_operands = 0 : i64, tpu.core_type = #tpu.core_type<tc>} {
    %c0 = arith.constant 0 : index
    %c0_0 = arith.constant 0 : index
    %0 = vector.load %arg0[%c0, %c0_0] : memref<16x32xf32, #tpu.memory_space<vmem>>, vector<16x32xf32>
    %c0_1 = arith.constant 0 : index
    %c0_2 = arith.constant 0 : index
    %1 = vector.load %arg1[%c0_1, %c0_2] : memref<16x16xf32, #tpu.memory_space<vmem>>, vector<16x16xf32>
    %c0_3 = arith.constant 0 : index
    %c0_4 = arith.constant 0 : index
    %c0_5 = arith.constant 0 : index
    %2 = vector.load %arg2[%c0_3, %c0_4, %c0_5] : memref<8x1x8xf32, #tpu.memory_space<vmem>>, vector<8x1x8xf32>
    %c0_6 = arith.constant 0 : index
    %c0_7 = arith.constant 0 : index
    %3 = vector.load %arg5[%c0_6, %c0_7] : memref<32x96xf32, #tpu.memory_space<vmem>>, vector<32x96xf32>
    %c0_8 = arith.constant 0 : index
    %c0_9 = arith.constant 0 : index
    %4 = vector.load %arg6[%c0_8, %c0_9] : memref<1x96xf32, #tpu.memory_space<vmem>>, vector<1x96xf32>
    %c0_10 = arith.constant 0 : index
    %c0_11 = arith.constant 0 : index
    %5 = vector.load %arg7[%c0_10, %c0_11] : memref<32x32xf32, #tpu.memory_space<vmem>>, vector<32x32xf32>
    %c0_12 = arith.constant 0 : index
    %c0_13 = arith.constant 0 : index
    %6 = vector.load %arg8[%c0_12, %c0_13] : memref<1x32xf32, #tpu.memory_space<vmem>>, vector<1x32xf32>
    %cst = arith.constant dense<0.000000e+00> : vector<16x96xf32>
    %7 = tpu.matmul %0, %3, %cst {dimension_numbers = #tpu.dot_dimension_numbers<[1], [0], [0], [1], [0, 0, 1, 1], [], []>} : vector<16x32xf32>, vector<32x96xf32>, vector<16x96xf32> -> vector<16x96xf32>
    %8 = vector.broadcast %4 : vector<1x96xf32> to vector<16x96xf32>
    %9 = arith.addf %7, %8 : vector<16x96xf32>
    %10 = vector.shape_cast %9 : vector<16x96xf32> to vector<2x8x96xf32>
    %11 = vector.extract_strided_slice %10 {offsets = [0, 0, 0], sizes = [2, 8, 8], strides = [1, 1, 1]} : vector<2x8x96xf32> to vector<2x8x8xf32>
    %12 = vector.extract_strided_slice %10 {offsets = [0, 0, 8], sizes = [2, 8, 8], strides = [1, 1, 1]} : vector<2x8x96xf32> to vector<2x8x8xf32>
    %13 = vector.extract_strided_slice %10 {offsets = [0, 0, 16], sizes = [2, 8, 8], strides = [1, 1, 1]} : vector<2x8x96xf32> to vector<2x8x8xf32>
    %14 = vector.extract_strided_slice %10 {offsets = [0, 0, 24], sizes = [2, 8, 8], strides = [1, 1, 1]} : vector<2x8x96xf32> to vector<2x8x8xf32>
    %15 = tpu.concatenate %11, %12, %13, %14 in 0 : vector<2x8x8xf32>, vector<2x8x8xf32>, vector<2x8x8xf32>, vector<2x8x8xf32> -> vector<8x8x8xf32>
    %cst_14 = arith.constant 0.353553385 : f32
    %16 = vector.broadcast %cst_14 : f32 to vector<8x8x8xf32>
    %17 = arith.mulf %15, %16 : vector<8x8x8xf32>
    %18 = vector.extract_strided_slice %10 {offsets = [0, 0, 32], sizes = [2, 8, 8], strides = [1, 1, 1]} : vector<2x8x96xf32> to vector<2x8x8xf32>
    %19 = vector.extract_strided_slice %10 {offsets = [0, 0, 40], sizes = [2, 8, 8], strides = [1, 1, 1]} : vector<2x8x96xf32> to vector<2x8x8xf32>
    %20 = vector.extract_strided_slice %10 {offsets = [0, 0, 48], sizes = [2, 8, 8], strides = [1, 1, 1]} : vector<2x8x96xf32> to vector<2x8x8xf32>
    %21 = vector.extract_strided_slice %10 {offsets = [0, 0, 56], sizes = [2, 8, 8], strides = [1, 1, 1]} : vector<2x8x96xf32> to vector<2x8x8xf32>
    %22 = tpu.concatenate %18, %19, %20, %21 in 0 : vector<2x8x8xf32>, vector<2x8x8xf32>, vector<2x8x8xf32>, vector<2x8x8xf32> -> vector<8x8x8xf32>
    %23 = vector.extract_strided_slice %10 {offsets = [0, 0, 64], sizes = [2, 8, 8], strides = [1, 1, 1]} : vector<2x8x96xf32> to vector<2x8x8xf32>
    %24 = vector.extract_strided_slice %10 {offsets = [0, 0, 72], sizes = [2, 8, 8], strides = [1, 1, 1]} : vector<2x8x96xf32> to vector<2x8x8xf32>
    %25 = vector.extract_strided_slice %10 {offsets = [0, 0, 80], sizes = [2, 8, 8], strides = [1, 1, 1]} : vector<2x8x96xf32> to vector<2x8x8xf32>
    %26 = vector.extract_strided_slice %10 {offsets = [0, 0, 88], sizes = [2, 8, 8], strides = [1, 1, 1]} : vector<2x8x96xf32> to vector<2x8x8xf32>
    %27 = tpu.concatenate %23, %24, %25, %26 in 0 : vector<2x8x8xf32>, vector<2x8x8xf32>, vector<2x8x8xf32>, vector<2x8x8xf32> -> vector<8x8x8xf32>
    "tpu.trace_start"() <{level = 10 : i32, message = "zqd,zkd->zqk"}> : () -> ()
    %cst_15 = arith.constant dense<0.000000e+00> : vector<8x8x8xf32>
    %28 = tpu.matmul %17, %22, %cst_15 {dimension_numbers = #tpu.dot_dimension_numbers<[2], [2], [1], [1], [0, 0, 0, 1, 1, 1], [0], [0]>} : vector<8x8x8xf32>, vector<8x8x8xf32>, vector<8x8x8xf32> -> vector<8x8x8xf32>
    "tpu.trace_stop"() : () -> ()
    %29 = vector.broadcast %2 : vector<8x1x8xf32> to vector<8x8x8xf32>
    %30 = arith.addf %28, %29 : vector<8x8x8xf32>
    %cst_16 = arith.constant dense<0xFF800000> : vector<8x8xf32>
    %31 = vector.multi_reduction <maximumf>, %30, %cst_16 [2] : vector<8x8x8xf32> to vector<8x8xf32>
    %32 = vector.shape_cast %31 : vector<8x8xf32> to vector<8x8x1xf32>
    %33 = vector.broadcast %32 : vector<8x8x1xf32> to vector<8x8x8xf32>
    %34 = arith.subf %30, %33 : vector<8x8x8xf32>
    %35 = math.exp %34 : vector<8x8x8xf32>
    %cst_17 = arith.constant dense<0.000000e+00> : vector<8x8xf32>
    %36 = vector.multi_reduction <add>, %35, %cst_17 [2] : vector<8x8x8xf32> to vector<8x8xf32>
    %37 = vector.shape_cast %36 : vector<8x8xf32> to vector<8x8x1xf32>
    %38 = tpu.reciprocal %37 {approx = true} : vector<8x8x1xf32> -> vector<8x8x1xf32>
    %39 = vector.broadcast %38 : vector<8x8x1xf32> to vector<8x8x8xf32>
    %40 = arith.mulf %35, %39 : vector<8x8x8xf32>
    "tpu.trace_start"() <{level = 10 : i32, message = "zqk,zkd->zqd"}> : () -> ()
    %cst_18 = arith.constant dense<0.000000e+00> : vector<8x8x8xf32>
    %41 = tpu.matmul %40, %27, %cst_18 {dimension_numbers = #tpu.dot_dimension_numbers<[2], [1], [1], [2], [0, 0, 0, 1, 1, 2], [0], [0]>} : vector<8x8x8xf32>, vector<8x8x8xf32>, vector<8x8x8xf32> -> vector<8x8x8xf32>
    "tpu.trace_stop"() : () -> ()
    %42 = vector.extract_strided_slice %41 {offsets = [0, 0, 0], sizes = [2, 8, 8], strides = [1, 1, 1]} : vector<8x8x8xf32> to vector<2x8x8xf32>
    %43 = vector.shape_cast %42 : vector<2x8x8xf32> to vector<16x8xf32>
    %44 = vector.extract_strided_slice %41 {offsets = [2, 0, 0], sizes = [2, 8, 8], strides = [1, 1, 1]} : vector<8x8x8xf32> to vector<2x8x8xf32>
    %45 = vector.shape_cast %44 : vector<2x8x8xf32> to vector<16x8xf32>
    %46 = vector.extract_strided_slice %41 {offsets = [4, 0, 0], sizes = [2, 8, 8], strides = [1, 1, 1]} : vector<8x8x8xf32> to vector<2x8x8xf32>
    %47 = vector.shape_cast %46 : vector<2x8x8xf32> to vector<16x8xf32>
    %48 = vector.extract_strided_slice %41 {offsets = [6, 0, 0], sizes = [2, 8, 8], strides = [1, 1, 1]} : vector<8x8x8xf32> to vector<2x8x8xf32>
    %49 = vector.shape_cast %48 : vector<2x8x8xf32> to vector<16x8xf32>
    %50 = tpu.concatenate %43, %45, %47, %49 in 1 : vector<16x8xf32>, vector<16x8xf32>, vector<16x8xf32>, vector<16x8xf32> -> vector<16x32xf32>
    %cst_19 = arith.constant dense<0.000000e+00> : vector<16x32xf32>
    %51 = tpu.matmul %50, %5, %cst_19 {dimension_numbers = #tpu.dot_dimension_numbers<[1], [0], [0], [1], [0, 0, 1, 1], [], []>} : vector<16x32xf32>, vector<32x32xf32>, vector<16x32xf32> -> vector<16x32xf32>
    %52 = vector.broadcast %6 : vector<1x32xf32> to vector<16x32xf32>
    %53 = arith.addf %51, %52 : vector<16x32xf32>
    %c0_20 = arith.constant 0 : index
    %c0_21 = arith.constant 0 : index
    %54 = vector.load %arg9[%c0_20, %c0_21] : memref<32x32xf32, #tpu.memory_space<vmem>>, vector<32x32xf32>
    %c0_22 = arith.constant 0 : index
    %c0_23 = arith.constant 0 : index
    %55 = vector.load %arg10[%c0_22, %c0_23] : memref<1x32xf32, #tpu.memory_space<vmem>>, vector<1x32xf32>
    %c0_24 = arith.constant 0 : index
    %c0_25 = arith.constant 0 : index
    %56 = vector.load %arg11[%c0_24, %c0_25] : memref<1x32xf32, #tpu.memory_space<vmem>>, vector<1x32xf32>
    %c0_26 = arith.constant 0 : index
    %c0_27 = arith.constant 0 : index
    %57 = vector.load %arg12[%c0_26, %c0_27] : memref<1x32xf32, #tpu.memory_space<vmem>>, vector<1x32xf32>
    %cst_28 = arith.constant dense<0.000000e+00> : vector<16x32xf32>
    %58 = tpu.matmul %53, %54, %cst_28 {dimension_numbers = #tpu.dot_dimension_numbers<[1], [0], [0], [1], [0, 0, 1, 1], [], []>} : vector<16x32xf32>, vector<32x32xf32>, vector<16x32xf32> -> vector<16x32xf32>
    %59 = vector.broadcast %55 : vector<1x32xf32> to vector<16x32xf32>
    %60 = arith.addf %58, %59 : vector<16x32xf32>
    %61 = arith.addf %60, %0 : vector<16x32xf32>
    %cst_29 = arith.constant dense<0.000000e+00> : vector<16xf32>
    %62 = vector.multi_reduction <add>, %61, %cst_29 [1] : vector<16x32xf32> to vector<16xf32>
    %63 = vector.shape_cast %62 : vector<16xf32> to vector<16x1xf32>
    %cst_30 = arith.constant 3.200000e+01 : f32
    %64 = vector.broadcast %cst_30 : f32 to vector<16x1xf32>
    %65 = arith.divf %63, %64 : vector<16x1xf32>
    %66 = vector.broadcast %65 : vector<16x1xf32> to vector<16x32xf32>
    %67 = arith.subf %61, %66 : vector<16x32xf32>
    %68 = arith.mulf %67, %67 : vector<16x32xf32>
    %cst_31 = arith.constant dense<0.000000e+00> : vector<16xf32>
    %69 = vector.multi_reduction <add>, %68, %cst_31 [1] : vector<16x32xf32> to vector<16xf32>
    %70 = vector.shape_cast %69 : vector<16xf32> to vector<16x1xf32>
    %cst_32 = arith.constant 3.200000e+01 : f32
    %71 = vector.broadcast %cst_32 : f32 to vector<16x1xf32>
    %72 = arith.divf %70, %71 : vector<16x1xf32>
    %cst_33 = arith.constant 9.99999974E-6 : f32
    %73 = vector.broadcast %cst_33 : f32 to vector<16x1xf32>
    %74 = arith.addf %72, %73 : vector<16x1xf32>
    %75 = math.rsqrt %74 : vector<16x1xf32>
    %76 = vector.broadcast %75 : vector<16x1xf32> to vector<16x32xf32>
    %77 = arith.mulf %67, %76 : vector<16x32xf32>
    %78 = vector.broadcast %56 : vector<1x32xf32> to vector<16x32xf32>
    %79 = arith.mulf %77, %78 : vector<16x32xf32>
    %80 = vector.broadcast %57 : vector<1x32xf32> to vector<16x32xf32>
    %81 = arith.addf %79, %80 : vector<16x32xf32>
    %c0_34 = arith.constant 0 : index
    %c0_35 = arith.constant 0 : index
    %c0_36 = arith.constant 0 : index
    %82 = vector.load %arg3[%c0_34, %c0_35, %c0_36] : memref<8x1x8xf32, #tpu.memory_space<vmem>>, vector<8x1x8xf32>
    %c0_37 = arith.constant 0 : index
    %c0_38 = arith.constant 0 : index
    %83 = vector.load %arg13[%c0_37, %c0_38] : memref<16x48xf32, #tpu.memory_space<vmem>>, vector<16x48xf32>
    %c0_39 = arith.constant 0 : index
    %c0_40 = arith.constant 0 : index
    %84 = vector.load %arg14[%c0_39, %c0_40] : memref<1x48xf32, #tpu.memory_space<vmem>>, vector<1x48xf32>
    %c0_41 = arith.constant 0 : index
    %c0_42 = arith.constant 0 : index
    %85 = vector.load %arg15[%c0_41, %c0_42] : memref<16x16xf32, #tpu.memory_space<vmem>>, vector<16x16xf32>
    %c0_43 = arith.constant 0 : index
    %c0_44 = arith.constant 0 : index
    %86 = vector.load %arg16[%c0_43, %c0_44] : memref<1x16xf32, #tpu.memory_space<vmem>>, vector<1x16xf32>
    %cst_45 = arith.constant dense<0.000000e+00> : vector<16x48xf32>
    %87 = tpu.matmul %1, %83, %cst_45 {dimension_numbers = #tpu.dot_dimension_numbers<[1], [0], [0], [1], [0, 0, 1, 1], [], []>} : vector<16x16xf32>, vector<16x48xf32>, vector<16x48xf32> -> vector<16x48xf32>
    %88 = vector.broadcast %84 : vector<1x48xf32> to vector<16x48xf32>
    %89 = arith.addf %87, %88 : vector<16x48xf32>
    %90 = vector.shape_cast %89 : vector<16x48xf32> to vector<2x8x48xf32>
    %91 = vector.extract_strided_slice %90 {offsets = [0, 0, 0], sizes = [2, 8, 4], strides = [1, 1, 1]} : vector<2x8x48xf32> to vector<2x8x4xf32>
    %92 = vector.extract_strided_slice %90 {offsets = [0, 0, 4], sizes = [2, 8, 4], strides = [1, 1, 1]} : vector<2x8x48xf32> to vector<2x8x4xf32>
    %93 = vector.extract_strided_slice %90 {offsets = [0, 0, 8], sizes = [2, 8, 4], strides = [1, 1, 1]} : vector<2x8x48xf32> to vector<2x8x4xf32>
    %94 = vector.extract_strided_slice %90 {offsets = [0, 0, 12], sizes = [2, 8, 4], strides = [1, 1, 1]} : vector<2x8x48xf32> to vector<2x8x4xf32>
    %95 = tpu.concatenate %91, %92, %93, %94 in 0 : vector<2x8x4xf32>, vector<2x8x4xf32>, vector<2x8x4xf32>, vector<2x8x4xf32> -> vector<8x8x4xf32>
    %cst_46 = arith.constant 5.000000e-01 : f32
    %96 = vector.broadcast %cst_46 : f32 to vector<8x8x4xf32>
    %97 = arith.mulf %95, %96 : vector<8x8x4xf32>
    %98 = vector.extract_strided_slice %90 {offsets = [0, 0, 16], sizes = [2, 8, 4], strides = [1, 1, 1]} : vector<2x8x48xf32> to vector<2x8x4xf32>
    %99 = vector.extract_strided_slice %90 {offsets = [0, 0, 20], sizes = [2, 8, 4], strides = [1, 1, 1]} : vector<2x8x48xf32> to vector<2x8x4xf32>
    %100 = vector.extract_strided_slice %90 {offsets = [0, 0, 24], sizes = [2, 8, 4], strides = [1, 1, 1]} : vector<2x8x48xf32> to vector<2x8x4xf32>
    %101 = vector.extract_strided_slice %90 {offsets = [0, 0, 28], sizes = [2, 8, 4], strides = [1, 1, 1]} : vector<2x8x48xf32> to vector<2x8x4xf32>
    %102 = tpu.concatenate %98, %99, %100, %101 in 0 : vector<2x8x4xf32>, vector<2x8x4xf32>, vector<2x8x4xf32>, vector<2x8x4xf32> -> vector<8x8x4xf32>
    %103 = vector.extract_strided_slice %90 {offsets = [0, 0, 32], sizes = [2, 8, 4], strides = [1, 1, 1]} : vector<2x8x48xf32> to vector<2x8x4xf32>
    %104 = vector.extract_strided_slice %90 {offsets = [0, 0, 36], sizes = [2, 8, 4], strides = [1, 1, 1]} : vector<2x8x48xf32> to vector<2x8x4xf32>
    %105 = vector.extract_strided_slice %90 {offsets = [0, 0, 40], sizes = [2, 8, 4], strides = [1, 1, 1]} : vector<2x8x48xf32> to vector<2x8x4xf32>
    %106 = vector.extract_strided_slice %90 {offsets = [0, 0, 44], sizes = [2, 8, 4], strides = [1, 1, 1]} : vector<2x8x48xf32> to vector<2x8x4xf32>
    %107 = tpu.concatenate %103, %104, %105, %106 in 0 : vector<2x8x4xf32>, vector<2x8x4xf32>, vector<2x8x4xf32>, vector<2x8x4xf32> -> vector<8x8x4xf32>
    "tpu.trace_start"() <{level = 10 : i32, message = "zqd,zkd->zqk"}> : () -> ()
    %cst_47 = arith.constant dense<0.000000e+00> : vector<8x8x8xf32>
    %108 = tpu.matmul %97, %102, %cst_47 {dimension_numbers = #tpu.dot_dimension_numbers<[2], [2], [1], [1], [0, 0, 0, 1, 1, 1], [0], [0]>} : vector<8x8x4xf32>, vector<8x8x4xf32>, vector<8x8x8xf32> -> vector<8x8x8xf32>
    "tpu.trace_stop"() : () -> ()
    %109 = vector.broadcast %82 : vector<8x1x8xf32> to vector<8x8x8xf32>
    %110 = arith.addf %108, %109 : vector<8x8x8xf32>
    %cst_48 = arith.constant dense<0xFF800000> : vector<8x8xf32>
    %111 = vector.multi_reduction <maximumf>, %110, %cst_48 [2] : vector<8x8x8xf32> to vector<8x8xf32>
    %112 = vector.shape_cast %111 : vector<8x8xf32> to vector<8x8x1xf32>
    %113 = vector.broadcast %112 : vector<8x8x1xf32> to vector<8x8x8xf32>
    %114 = arith.subf %110, %113 : vector<8x8x8xf32>
    %115 = math.exp %114 : vector<8x8x8xf32>
    %cst_49 = arith.constant dense<0.000000e+00> : vector<8x8xf32>
    %116 = vector.multi_reduction <add>, %115, %cst_49 [2] : vector<8x8x8xf32> to vector<8x8xf32>
    %117 = vector.shape_cast %116 : vector<8x8xf32> to vector<8x8x1xf32>
    %118 = tpu.reciprocal %117 {approx = true} : vector<8x8x1xf32> -> vector<8x8x1xf32>
    %119 = vector.broadcast %118 : vector<8x8x1xf32> to vector<8x8x8xf32>
    %120 = arith.mulf %115, %119 : vector<8x8x8xf32>
    "tpu.trace_start"() <{level = 10 : i32, message = "zqk,zkd->zqd"}> : () -> ()
    %cst_50 = arith.constant dense<0.000000e+00> : vector<8x8x4xf32>
    %121 = tpu.matmul %120, %107, %cst_50 {dimension_numbers = #tpu.dot_dimension_numbers<[2], [1], [1], [2], [0, 0, 0, 1, 1, 2], [0], [0]>} : vector<8x8x8xf32>, vector<8x8x4xf32>, vector<8x8x4xf32> -> vector<8x8x4xf32>
    "tpu.trace_stop"() : () -> ()
    %122 = vector.extract_strided_slice %121 {offsets = [0, 0, 0], sizes = [2, 8, 4], strides = [1, 1, 1]} : vector<8x8x4xf32> to vector<2x8x4xf32>
    %123 = vector.shape_cast %122 : vector<2x8x4xf32> to vector<16x4xf32>
    %124 = vector.extract_strided_slice %121 {offsets = [2, 0, 0], sizes = [2, 8, 4], strides = [1, 1, 1]} : vector<8x8x4xf32> to vector<2x8x4xf32>
    %125 = vector.shape_cast %124 : vector<2x8x4xf32> to vector<16x4xf32>
    %126 = vector.extract_strided_slice %121 {offsets = [4, 0, 0], sizes = [2, 8, 4], strides = [1, 1, 1]} : vector<8x8x4xf32> to vector<2x8x4xf32>
    %127 = vector.shape_cast %126 : vector<2x8x4xf32> to vector<16x4xf32>
    %128 = vector.extract_strided_slice %121 {offsets = [6, 0, 0], sizes = [2, 8, 4], strides = [1, 1, 1]} : vector<8x8x4xf32> to vector<2x8x4xf32>
    %129 = vector.shape_cast %128 : vector<2x8x4xf32> to vector<16x4xf32>
    %130 = tpu.concatenate %123, %125, %127, %129 in 1 : vector<16x4xf32>, vector<16x4xf32>, vector<16x4xf32>, vector<16x4xf32> -> vector<16x16xf32>
    %cst_51 = arith.constant dense<0.000000e+00> : vector<16x16xf32>
    %131 = tpu.matmul %130, %85, %cst_51 {dimension_numbers = #tpu.dot_dimension_numbers<[1], [0], [0], [1], [0, 0, 1, 1], [], []>} : vector<16x16xf32>, vector<16x16xf32>, vector<16x16xf32> -> vector<16x16xf32>
    %132 = vector.broadcast %86 : vector<1x16xf32> to vector<16x16xf32>
    %133 = arith.addf %131, %132 : vector<16x16xf32>
    %c0_52 = arith.constant 0 : index
    %c0_53 = arith.constant 0 : index
    %134 = vector.load %arg17[%c0_52, %c0_53] : memref<16x16xf32, #tpu.memory_space<vmem>>, vector<16x16xf32>
    %c0_54 = arith.constant 0 : index
    %c0_55 = arith.constant 0 : index
    %135 = vector.load %arg18[%c0_54, %c0_55] : memref<1x16xf32, #tpu.memory_space<vmem>>, vector<1x16xf32>
    %c0_56 = arith.constant 0 : index
    %c0_57 = arith.constant 0 : index
    %136 = vector.load %arg19[%c0_56, %c0_57] : memref<1x16xf32, #tpu.memory_space<vmem>>, vector<1x16xf32>
    %c0_58 = arith.constant 0 : index
    %c0_59 = arith.constant 0 : index
    %137 = vector.load %arg20[%c0_58, %c0_59] : memref<1x16xf32, #tpu.memory_space<vmem>>, vector<1x16xf32>
    %cst_60 = arith.constant dense<0.000000e+00> : vector<16x16xf32>
    %138 = tpu.matmul %133, %134, %cst_60 {dimension_numbers = #tpu.dot_dimension_numbers<[1], [0], [0], [1], [0, 0, 1, 1], [], []>} : vector<16x16xf32>, vector<16x16xf32>, vector<16x16xf32> -> vector<16x16xf32>
    %139 = vector.broadcast %135 : vector<1x16xf32> to vector<16x16xf32>
    %140 = arith.addf %138, %139 : vector<16x16xf32>
    %141 = arith.addf %140, %1 : vector<16x16xf32>
    %cst_61 = arith.constant dense<0.000000e+00> : vector<16xf32>
    %142 = vector.multi_reduction <add>, %141, %cst_61 [1] : vector<16x16xf32> to vector<16xf32>
    %143 = vector.shape_cast %142 : vector<16xf32> to vector<16x1xf32>
    %cst_62 = arith.constant 1.600000e+01 : f32
    %144 = vector.broadcast %cst_62 : f32 to vector<16x1xf32>
    %145 = arith.divf %143, %144 : vector<16x1xf32>
    %146 = vector.broadcast %145 : vector<16x1xf32> to vector<16x16xf32>
    %147 = arith.subf %141, %146 : vector<16x16xf32>
    %148 = arith.mulf %147, %147 : vector<16x16xf32>
    %cst_63 = arith.constant dense<0.000000e+00> : vector<16xf32>
    %149 = vector.multi_reduction <add>, %148, %cst_63 [1] : vector<16x16xf32> to vector<16xf32>
    %150 = vector.shape_cast %149 : vector<16xf32> to vector<16x1xf32>
    %cst_64 = arith.constant 1.600000e+01 : f32
    %151 = vector.broadcast %cst_64 : f32 to vector<16x1xf32>
    %152 = arith.divf %150, %151 : vector<16x1xf32>
    %cst_65 = arith.constant 9.99999974E-6 : f32
    %153 = vector.broadcast %cst_65 : f32 to vector<16x1xf32>
    %154 = arith.addf %152, %153 : vector<16x1xf32>
    %155 = math.rsqrt %154 : vector<16x1xf32>
    %156 = vector.broadcast %155 : vector<16x1xf32> to vector<16x16xf32>
    %157 = arith.mulf %147, %156 : vector<16x16xf32>
    %158 = vector.broadcast %136 : vector<1x16xf32> to vector<16x16xf32>
    %159 = arith.mulf %157, %158 : vector<16x16xf32>
    %160 = vector.broadcast %137 : vector<1x16xf32> to vector<16x16xf32>
    %161 = arith.addf %159, %160 : vector<16x16xf32>
    %c0_66 = arith.constant 0 : index
    %c0_67 = arith.constant 0 : index
    %162 = vector.load %arg4[%c0_66, %c0_67] : memref<16x1xf32, #tpu.memory_space<vmem>>, vector<16x1xf32>
    %163 = vector.broadcast %162 : vector<16x1xf32> to vector<16x16xf32>
    %164 = arith.mulf %161, %163 : vector<16x16xf32>
    %c0_68 = arith.constant 0 : index
    %c0_69 = arith.constant 0 : index
    %165 = vector.load %arg21[%c0_68, %c0_69] : memref<32x64xf32, #tpu.memory_space<vmem>>, vector<32x64xf32>
    %cst_70 = arith.constant dense<0.000000e+00> : vector<16x64xf32>
    %166 = tpu.matmul %81, %165, %cst_70 {dimension_numbers = #tpu.dot_dimension_numbers<[1], [0], [0], [1], [0, 0, 1, 1], [], []>} : vector<16x32xf32>, vector<32x64xf32>, vector<16x64xf32> -> vector<16x64xf32>
    %c0_71 = arith.constant 0 : index
    %c0_72 = arith.constant 0 : index
    %167 = vector.load %arg22[%c0_71, %c0_72] : memref<1x64xf32, #tpu.memory_space<vmem>>, vector<1x64xf32>
    %168 = vector.broadcast %167 : vector<1x64xf32> to vector<16x64xf32>
    %169 = arith.addf %166, %168 : vector<16x64xf32>
    %c0_73 = arith.constant 0 : index
    %c0_74 = arith.constant 0 : index
    %170 = vector.load %arg23[%c0_73, %c0_74] : memref<16x64xf32, #tpu.memory_space<vmem>>, vector<16x64xf32>
    %cst_75 = arith.constant dense<0.000000e+00> : vector<16x64xf32>
    %171 = tpu.matmul %164, %170, %cst_75 {dimension_numbers = #tpu.dot_dimension_numbers<[1], [0], [0], [1], [0, 0, 1, 1], [], []>} : vector<16x16xf32>, vector<16x64xf32>, vector<16x64xf32> -> vector<16x64xf32>
    %172 = arith.addf %169, %171 : vector<16x64xf32>
    %c0_76 = arith.constant 0 : index
    %c0_77 = arith.constant 0 : index
    %173 = vector.load %arg24[%c0_76, %c0_77] : memref<1x64xf32, #tpu.memory_space<vmem>>, vector<1x64xf32>
    %174 = vector.broadcast %173 : vector<1x64xf32> to vector<16x64xf32>
    %175 = arith.addf %172, %174 : vector<16x64xf32>
    %cst_78 = arith.constant 5.000000e-01 : f32
    %176 = vector.broadcast %cst_78 : f32 to vector<16x64xf32>
    %177 = arith.mulf %176, %175 : vector<16x64xf32>
    %cst_79 = arith.constant 4.471500e-02 : f32
    %178 = vector.broadcast %cst_79 : f32 to vector<16x64xf32>
    %179 = arith.mulf %178, %175 : vector<16x64xf32>
    %180 = arith.mulf %179, %175 : vector<16x64xf32>
    %181 = arith.mulf %180, %175 : vector<16x64xf32>
    %182 = arith.addf %175, %181 : vector<16x64xf32>
    %cst_80 = arith.constant 0.797884583 : f32
    %183 = vector.broadcast %cst_80 : f32 to vector<16x64xf32>
    %184 = arith.mulf %183, %182 : vector<16x64xf32>
    %185 = math.tanh %184 : vector<16x64xf32>
    %cst_81 = arith.constant 1.000000e+00 : f32
    %186 = vector.broadcast %cst_81 : f32 to vector<16x64xf32>
    %187 = arith.addf %186, %185 : vector<16x64xf32>
    %188 = arith.mulf %177, %187 : vector<16x64xf32>
    %c0_82 = arith.constant 0 : index
    %c0_83 = arith.constant 0 : index
    %189 = vector.load %arg25[%c0_82, %c0_83] : memref<64x32xf32, #tpu.memory_space<vmem>>, vector<64x32xf32>
    %c0_84 = arith.constant 0 : index
    %c0_85 = arith.constant 0 : index
    %190 = vector.load %arg26[%c0_84, %c0_85] : memref<1x32xf32, #tpu.memory_space<vmem>>, vector<1x32xf32>
    %c0_86 = arith.constant 0 : index
    %c0_87 = arith.constant 0 : index
    %191 = vector.load %arg27[%c0_86, %c0_87] : memref<1x32xf32, #tpu.memory_space<vmem>>, vector<1x32xf32>
    %c0_88 = arith.constant 0 : index
    %c0_89 = arith.constant 0 : index
    %192 = vector.load %arg28[%c0_88, %c0_89] : memref<1x32xf32, #tpu.memory_space<vmem>>, vector<1x32xf32>
    %cst_90 = arith.constant dense<0.000000e+00> : vector<16x32xf32>
    %193 = tpu.matmul %188, %189, %cst_90 {dimension_numbers = #tpu.dot_dimension_numbers<[1], [0], [0], [1], [0, 0, 1, 1], [], []>} : vector<16x64xf32>, vector<64x32xf32>, vector<16x32xf32> -> vector<16x32xf32>
    %194 = vector.broadcast %190 : vector<1x32xf32> to vector<16x32xf32>
    %195 = arith.addf %193, %194 : vector<16x32xf32>
    %196 = arith.addf %195, %81 : vector<16x32xf32>
    %cst_91 = arith.constant dense<0.000000e+00> : vector<16xf32>
    %197 = vector.multi_reduction <add>, %196, %cst_91 [1] : vector<16x32xf32> to vector<16xf32>
    %198 = vector.shape_cast %197 : vector<16xf32> to vector<16x1xf32>
    %cst_92 = arith.constant 3.200000e+01 : f32
    %199 = vector.broadcast %cst_92 : f32 to vector<16x1xf32>
    %200 = arith.divf %198, %199 : vector<16x1xf32>
    %201 = vector.broadcast %200 : vector<16x1xf32> to vector<16x32xf32>
    %202 = arith.subf %196, %201 : vector<16x32xf32>
    %203 = arith.mulf %202, %202 : vector<16x32xf32>
    %cst_93 = arith.constant dense<0.000000e+00> : vector<16xf32>
    %204 = vector.multi_reduction <add>, %203, %cst_93 [1] : vector<16x32xf32> to vector<16xf32>
    %205 = vector.shape_cast %204 : vector<16xf32> to vector<16x1xf32>
    %cst_94 = arith.constant 3.200000e+01 : f32
    %206 = vector.broadcast %cst_94 : f32 to vector<16x1xf32>
    %207 = arith.divf %205, %206 : vector<16x1xf32>
    %cst_95 = arith.constant 9.99999974E-6 : f32
    %208 = vector.broadcast %cst_95 : f32 to vector<16x1xf32>
    %209 = arith.addf %207, %208 : vector<16x1xf32>
    %210 = math.rsqrt %209 : vector<16x1xf32>
    %211 = vector.broadcast %210 : vector<16x1xf32> to vector<16x32xf32>
    %212 = arith.mulf %202, %211 : vector<16x32xf32>
    %213 = vector.broadcast %191 : vector<1x32xf32> to vector<16x32xf32>
    %214 = arith.mulf %212, %213 : vector<16x32xf32>
    %215 = vector.broadcast %192 : vector<1x32xf32> to vector<16x32xf32>
    %216 = arith.addf %214, %215 : vector<16x32xf32>
    %c0_96 = arith.constant 0 : index
    %c0_97 = arith.constant 0 : index
    %217 = vector.load %arg33[%c0_96, %c0_97] : memref<16x32xf32, #tpu.memory_space<vmem>>, vector<16x32xf32>
    tpu.vector_store %arg33[%c0_96, %c0_97], %216 {strides = array<i32>} : memref<16x32xf32, #tpu.memory_space<vmem>>, vector<16x32xf32>,
    %c0_98 = arith.constant 0 : index
    %c0_99 = arith.constant 0 : index
    %218 = vector.load %arg29[%c0_98, %c0_99] : memref<64x16xf32, #tpu.memory_space<vmem>>, vector<64x16xf32>
    %c0_100 = arith.constant 0 : index
    %c0_101 = arith.constant 0 : index
    %219 = vector.load %arg30[%c0_100, %c0_101] : memref<1x16xf32, #tpu.memory_space<vmem>>, vector<1x16xf32>
    %c0_102 = arith.constant 0 : index
    %c0_103 = arith.constant 0 : index
    %220 = vector.load %arg31[%c0_102, %c0_103] : memref<1x16xf32, #tpu.memory_space<vmem>>, vector<1x16xf32>
    %c0_104 = arith.constant 0 : index
    %c0_105 = arith.constant 0 : index
    %221 = vector.load %arg32[%c0_104, %c0_105] : memref<1x16xf32, #tpu.memory_space<vmem>>, vector<1x16xf32>
    %cst_106 = arith.constant dense<0.000000e+00> : vector<16x16xf32>
    %222 = tpu.matmul %188, %218, %cst_106 {dimension_numbers = #tpu.dot_dimension_numbers<[1], [0], [0], [1], [0, 0, 1, 1], [], []>} : vector<16x64xf32>, vector<64x16xf32>, vector<16x16xf32> -> vector<16x16xf32>
    %223 = vector.broadcast %219 : vector<1x16xf32> to vector<16x16xf32>
    %224 = arith.addf %222, %223 : vector<16x16xf32>
    %225 = arith.addf %224, %164 : vector<16x16xf32>
    %cst_107 = arith.constant dense<0.000000e+00> : vector<16xf32>
    %226 = vector.multi_reduction <add>, %225, %cst_107 [1] : vector<16x16xf32> to vector<16xf32>
    %227 = vector.shape_cast %226 : vector<16xf32> to vector<16x1xf32>
    %cst_108 = arith.constant 1.600000e+01 : f32
    %228 = vector.broadcast %cst_108 : f32 to vector<16x1xf32>
    %229 = arith.divf %227, %228 : vector<16x1xf32>
    %230 = vector.broadcast %229 : vector<16x1xf32> to vector<16x16xf32>
    %231 = arith.subf %225, %230 : vector<16x16xf32>
    %232 = arith.mulf %231, %231 : vector<16x16xf32>
    %cst_109 = arith.constant dense<0.000000e+00> : vector<16xf32>
    %233 = vector.multi_reduction <add>, %232, %cst_109 [1] : vector<16x16xf32> to vector<16xf32>
    %234 = vector.shape_cast %233 : vector<16xf32> to vector<16x1xf32>
    %cst_110 = arith.constant 1.600000e+01 : f32
    %235 = vector.broadcast %cst_110 : f32 to vector<16x1xf32>
    %236 = arith.divf %234, %235 : vector<16x1xf32>
    %cst_111 = arith.constant 9.99999974E-6 : f32
    %237 = vector.broadcast %cst_111 : f32 to vector<16x1xf32>
    %238 = arith.addf %236, %237 : vector<16x1xf32>
    %239 = math.rsqrt %238 : vector<16x1xf32>
    %240 = vector.broadcast %239 : vector<16x1xf32> to vector<16x16xf32>
    %241 = arith.mulf %231, %240 : vector<16x16xf32>
    %242 = vector.broadcast %220 : vector<1x16xf32> to vector<16x16xf32>
    %243 = arith.mulf %241, %242 : vector<16x16xf32>
    %244 = vector.broadcast %221 : vector<1x16xf32> to vector<16x16xf32>
    %245 = arith.addf %243, %244 : vector<16x16xf32>
    %c0_112 = arith.constant 0 : index
    %c0_113 = arith.constant 0 : index
    %246 = vector.load %arg34[%c0_112, %c0_113] : memref<16x16xf32, #tpu.memory_space<vmem>>, vector<16x16xf32>
    tpu.vector_store %arg34[%c0_112, %c0_113], %245 {strides = array<i32>} : memref<16x16xf32, #tpu.memory_space<vmem>>, vector<16x16xf32>,
    return
  }
}

</mosaic_0001>

<bundles_post_ra>
// kernel: tpu_custom_call.1
= control target key start
LH: loop header
LB: loop body
LE: loop exit
PB: predicated region body
PF: predicated region fallthrough
CT: control target
= control target key end

     0   :  { %s5421_s6 = smov 1   ;;  %s5422_s10 = smov 2   ;;  %s6211_s0 = inlined_call_operand.smem [shape: u32[35], index: -1, kind: input, shape index: {}] }
   0x1   :  { %s5494_s5 = sld [smem:[%s6211_s0]]   ;;  %s5423_s14 = smov 3  }
   0x2   :  { %s5499_s9 = sld [smem:[%s6211_s0 + %s5421_s6]]   ;;  %s5424_s18 = smov 4  }
   0x3   :  { %s5504_s13 = sld [smem:[%s6211_s0 + %s5422_s10]]   ;;  %s5425_s22 = smov 5  }
   0x4   :  { %s5509_s17 = sld [smem:[%s6211_s0 + %s5423_s14]]   ;;  %s5426_s26 = smov 6  }
   0x5   :  { %s5514_s21 = sld [smem:[%s6211_s0 + %s5424_s18]]   ;;  %s5427_s30 = smov 7  }
   0x6   :  { %s5519_s25 = sld [smem:[%s6211_s0 + %s5425_s22]]   ;;  %s5428_s4 = smov 8  }
   0x7   :  { %s5524_s29 = sld [smem:[%s6211_s0 + %s5426_s26]]   ;;  %s5429_s10 = smov 9  }
   0x8   :  { %6223 = sst [smem:[#allocation34_spill]] %s5499_s9  ;;  %s5430_s15 = smov 10  }
   0x9   :  { %s5529_s3 = sld [smem:[%s6211_s0 + %s5427_s30]]   ;;  %s5431_s20 = smov 11  }
   0xa   :  { %s5534_s8 = sld [smem:[%s6211_s0 + %s5428_s4]]   ;;  %s5432_s26 = smov 12  }
   0xb   :  { %6224 = sst [smem:[#allocation35_spill]] %s5514_s21  ;;  %s5433_s1 = smov 13  }
   0xc   :  { %s5539_s14 = sld [smem:[%s6211_s0 + %s5429_s10]]   ;;  %s5434_s7 = smov 14  }
   0xd   :  { %s5544_s19 = sld [smem:[%s6211_s0 + %s5430_s15]]   ;;  %s5435_s15 = smov 15  }
   0xe   :  { %s5549_s24 = sld [smem:[%s6211_s0 + %s5431_s20]]   ;;  %s5436_s22 = smov 16  }
   0xf   :  { %6225 = sst [smem:[#allocation36_spill]] %s5529_s3  ;;  %s5437_s28 = smov 17  }
  0x10   :  { %s5554_s30 = sld [smem:[%s6211_s0 + %s5432_s26]]  }
  0x11   :  { %s5559_s6 = sld [smem:[%s6211_s0 + %s5433_s1]]  }
  0x12   :  { %6226 = sst [smem:[#allocation37_spill]] %s5539_s14 }
  0x13   :  { %s5564_s12 = sld [smem:[%s6211_s0 + %s5434_s7]]   ;;  %s5438_s7 = smov 18  }
  0x14   :  { %s5569_s20 = sld [smem:[%s6211_s0 + %s5435_s15]]   ;;  %s5439_s15 = smov 19  }
  0x15   :  { %s5574_s27 = sld [smem:[%s6211_s0 + %s5436_s22]]   ;;  %s5440_s22 = smov 20  }
  0x16   :  { %s5579_s4 = sld [smem:[%s6211_s0 + %s5437_s28]]   ;;  %s5441_s28 = smov 21  }
  0x17   :  { %6227 = sst [smem:[#allocation38_spill]] %s5559_s6 }
  0x18   :  { %s5584_s21 = sld [smem:[%s6211_s0 + %s5438_s7]]   ;;  %s5442_s7 = smov 22  }
  0x19   :  { %s5594_s9 = sld [smem:[%s6211_s0 + %s5440_s22]]   ;;  %s5444_s22 = smov 24  }
  0x1a   :  { %6228 = sst [smem:[#allocation39_spill]] %s5569_s20 }
  0x1b   :  { %s5589_s20 = sld [smem:[%s6211_s0 + %s5439_s15]]   ;;  %s5443_s15 = smov 23  }
  0x1c   :  { %6229 = sst [smem:[#allocation40_spill]] %s5579_s4 }
  0x1d   :  { %s5599_s4 = sld [smem:[%s6211_s0 + %s5441_s28]]   ;;  %s5445_s28 = smov 25  }
  0x1e   :  { %s5604_s14 = sld [smem:[%s6211_s0 + %s5442_s7]]   ;;  %s5446_s7 = smov 26  }
  0x1f   :  { %s5609_s6 = sld [smem:[%s6211_s0 + %s5443_s15]]   ;;  %s5447_s15 = smov 27  }
  0x20   :  { %s5614_s3 = sld [smem:[%s6211_s0 + %s5444_s22]]   ;;  %s5448_s22 = smov 28  }
  0x23   :  { %6230 = sst [smem:[#allocation41_spill]] %s5599_s4 }
  0x24   :  { %6231 = sst [smem:[#allocation42_spill]] %s5604_s14 }
  0x25   :  { %6232 = sst [smem:[#allocation43_spill]] %s5609_s6 }
  0x26   :  { %6233 = sst [smem:[#allocation44_spill]] %s5614_s3 }
  0x27   :  { %s5619_s4 = sld [smem:[%s6211_s0 + %s5445_s28]]   ;;  %s5449_s28 = smov 29  }
  0x28   :  { %s5624_s14 = sld [smem:[%s6211_s0 + %s5446_s7]]   ;;  %s5450_s7 = smov 30  }
  0x29   :  { %s5629_s6 = sld [smem:[%s6211_s0 + %s5447_s15]]   ;;  %s5451_s15 = smov 31  }
  0x2a   :  { %s5634_s3 = sld [smem:[%s6211_s0 + %s5448_s22]]   ;;  %s5452_s22 = smov 32  }
  0x2d   :  { %6234 = sst [smem:[#allocation45_spill]] %s5619_s4 }
  0x2e   :  { %6235 = sst [smem:[#allocation46_spill]] %s5624_s14 }
  0x2f   :  { %6236 = sst [smem:[#allocation47_spill]] %s5629_s6 }
  0x30   :  { %6237 = sst [smem:[#allocation48_spill]] %s5634_s3 }
  0x31   :  { %s5639_s4 = sld [smem:[%s6211_s0 + %s5449_s28]]   ;;  %s5453_s28 = smov 33  }
  0x32   :  { %s5644_s14 = sld [smem:[%s6211_s0 + %s5450_s7]]   ;;  %s5454_s7 = smov 34  }
  0x33   :  { %s5649_s6 = sld [smem:[%s6211_s0 + %s5451_s15]]  }
  0x34   :  { %s5654_s3 = sld [smem:[%s6211_s0 + %s5452_s22]]  }
  0x37   :  { %6238 = sst [smem:[#allocation49_spill]] %s5639_s4 }
  0x38   :  { %6239 = sst [smem:[#allocation50_spill]] %s5644_s14 }
  0x39   :  { %s5659_s4 = sld [smem:[%s6211_s0 + %s5453_s28]]  }
  0x3a   :  { %s5664_s14 = sld [smem:[%s6211_s0 + %s5454_s7]]  }
  0x3b   :  { %75 = vsyncpa [#allocation3], 0 }
  0x3c   :  { %76 = vsyncpa [#allocation6], 0 }
  0x3d   :  { %77 = vsyncpa [#allocation9], 0 }
  0x3e   :  { %78 = vsyncpa [#allocation12], 0 }
  0x3f   :  { %79 = vsyncpa [#allocation15], 0 }
  0x40   :  { %80 = vsyncpa [#allocation18], 0 }
  0x41   :  { %81 = vsyncpa [#allocation21], 0 }
  0x42   :  { %82 = vsyncpa [#allocation4], 0 }
  0x43   :  { %83 = vsyncpa [#allocation24], 0  ;;  %s5455_s15 = smov [#allocation5]   ;;  %s5456_s18 = smov [#allocation8]  }
  0x44   :  { %s105_s16 = sshll.u32 %s5455_s15, 4  ;;  %s134_s22 = sshll.u32 %s5456_s18, 4  ;;  %s106_s16 = int_to_ptr.vmem [resolvable:$true] %s105_s16  ;;  %s5666_s22 = int_to_ptr.vmem [resolvable:$true] %s134_s22 }
  0x45   :  { %s5095_s0 = scalar_lea.hbm %s5509_s17, 128 }
  0x46   :  { %p5096_p0 = scmp.ne.s32.totalorder %s5509_s17, %s5095_s0  ;;  %p5099_p1 = scmp.lt.u32.totalorder %s5095_s0, %s5509_s17 }
  0x48   :  { %p5101_p2 = pnand %p5099_p1, %p5096_p0 }
  0x4a   :  { %5104 = shalt.err (!%p5101_p2)
}
  0x4b   :  { %s5105_s23 = scalar_lea.vmem %s106_s16, 128  ;;  %p5110_p4 = scmp.lt.s32.totalorder %s106_s16, %s106_s16 }
  0x4c   :  { %p5106_p3 = scmp.ne.s32.totalorder %s106_s16, %s5105_s23  ;;  %p5111_p5 = scmp.lt.s32.totalorder %s5105_s23, %s5105_s23 }
  0x4e   :  { %p5112_p6 = por %p5111_p5, %p5110_p4 }
  0x50   :  { %p5113_p7 = pnand %p5112_p6, %p5106_p3 }
  0x52   :  { %5116 = shalt.err (!%p5113_p7)
}
  0x53   :  { %s5457_s26 = smov 16   ;;  %s5458_s28 = smov 1  }
  0x54   :  { %111 = dma.hbm_to_vmem [thread:$0]  %s5509_s17, 128, %s106_s16, [#allocation6], %s5457_s26, %s5457_s26, %s5458_s28  }
  0x55   :  { %s5117_s1 = scalar_lea.hbm %s5534_s8, 16 }
  0x56   :  { %p5118_p8 = scmp.ne.s32.totalorder %s5534_s8, %s5117_s1  ;;  %p5121_p9 = scmp.lt.u32.totalorder %s5117_s1, %s5534_s8 }
  0x58   :  { %p5123_p10 = pnand %p5121_p9, %p5118_p8 }
  0x5a   :  { %5126 = shalt.err (!%p5123_p10)
}
  0x5b   :  { %s5127_s2 = scalar_lea.vmem %s5666_s22, 16  ;;  %s5131_s7 = scalar_lea.vmem %s5666_s22, 32 }
  0x5c   :  { %p5128_p11 = scmp.ne.s32.totalorder %s5666_s22, %s5127_s2  ;;  %p5132_p12 = scmp.lt.s32.totalorder %s5666_s22, %s5666_s22 }
  0x5d   :  { %p5133_p13 = scmp.lt.s32.totalorder %s5131_s7, %s5127_s2 }
  0x5f   :  { %p5134_p0 = por %p5133_p13, %p5132_p12 }
  0x61   :  { %p5135_p1 = pnand %p5134_p0, %p5128_p11 }
  0x63   :  { %5138 = shalt.err (!%p5135_p1)
}
  0x64   :  { %137 = dma.hbm_to_vmem [thread:$0]  %s5534_s8, 16, %s5666_s22, [#allocation9]  }
  0x65   :  { %s5459_s17 = smov [#allocation11]   ;;  %s5460_s11 = smov [#allocation14]  }
  0x66   :  { %s156_s10 = sshll.u32 %s5459_s17, 4  ;;  %s178_s15 = sshll.u32 %s5460_s11, 4  ;;  %s157_s10 = int_to_ptr.vmem [resolvable:$true] %s156_s10  ;;  %s179_s15 = int_to_ptr.vmem [resolvable:$true] %s178_s15 }
  0x67   :  { %s5139_s16 = scalar_lea.hbm %s5549_s24, 16 }
  0x68   :  { %p5140_p2 = scmp.ne.s32.totalorder %s5549_s24, %s5139_s16  ;;  %p5143_p3 = scmp.lt.u32.totalorder %s5139_s16, %s5549_s24 }
  0x6a   :  { %p5145_p4 = pnand %p5143_p3, %p5140_p2 }
  0x6c   :  { %5148 = shalt.err (!%p5145_p4)
}
  0x6d   :  { %s5149_s18 = scalar_lea.vmem %s157_s10, 16  ;;  %s5153_s0 = scalar_lea.vmem %s157_s10, 32 }
  0x6e   :  { %p5150_p5 = scmp.ne.s32.totalorder %s157_s10, %s5149_s18  ;;  %p5154_p6 = scmp.lt.s32.totalorder %s157_s10, %s157_s10 }
  0x6f   :  { %p5155_p7 = scmp.lt.s32.totalorder %s5153_s0, %s5149_s18 }
  0x71   :  { %p5156_p8 = por %p5155_p7, %p5154_p6 }
  0x73   :  { %p5157_p9 = pnand %p5156_p8, %p5150_p5 }
  0x75   :  { %5160 = shalt.err (!%p5157_p9)
}
  0x76   :  { %159 = dma.hbm_to_vmem [thread:$0]  %s5549_s24, 16, %s157_s10, [#allocation12]  }
  0x77   :  { %s5161_s8 = scalar_lea.hbm %s5564_s12, 16 }
  0x78   :  { %p5162_p10 = scmp.ne.s32.totalorder %s5564_s12, %s5161_s8  ;;  %p5165_p11 = scmp.lt.u32.totalorder %s5161_s8, %s5564_s12 }
  0x7a   :  { %p5167_p12 = pnand %p5165_p11, %p5162_p10 }
  0x7c   :  { %5170 = shalt.err (!%p5167_p12)
}
  0x7d   :  { %s5171_s22 = scalar_lea.vmem %s179_s15, 16  ;;  %s5175_s23 = scalar_lea.vmem %s179_s15, 32 }
  0x7e   :  { %p5172_p13 = scmp.ne.s32.totalorder %s179_s15, %s5171_s22  ;;  %p5176_p0 = scmp.lt.s32.totalorder %s179_s15, %s179_s15 }
  0x7f   :  { %p5177_p1 = scmp.lt.s32.totalorder %s5175_s23, %s5171_s22 }
  0x81   :  { %p5178_p2 = por %p5177_p1, %p5176_p0 }
  0x83   :  { %p5179_p3 = pnand %p5178_p2, %p5172_p13 }
  0x85   :  { %5182 = shalt.err (!%p5179_p3)
}
  0x86   :  { %181 = dma.hbm_to_vmem [thread:$0]  %s5564_s12, 16, %s179_s15, [#allocation15]  }
  0x87   :  { %s5461_s1 = smov [#allocation17]   ;;  %s5462_s2 = smov [#allocation2]  }
  0x88   :  { %s202_s24 = sshll.u32 %s5461_s1, 4  ;;  %s93_s7 = sshll.u32 %s5462_s2, 4  ;;  %s203_s24 = int_to_ptr.vmem [resolvable:$true] %s202_s24  ;;  %s5693_s7 = int_to_ptr.vmem [resolvable:$true] %s93_s7 }
  0x89   :  { %s5183_s17 = scalar_lea.hbm %s5584_s21, 16 }
  0x8a   :  { %p5184_p4 = scmp.ne.s32.totalorder %s5584_s21, %s5183_s17  ;;  %p5187_p5 = scmp.lt.u32.totalorder %s5183_s17, %s5584_s21 }
  0x8c   :  { %p5189_p6 = pnand %p5187_p5, %p5184_p4 }
  0x8e   :  { %5192 = shalt.err (!%p5189_p6)
}
  0x8f   :  { %s5193_s10 = scalar_lea.vmem %s203_s24, 16  ;;  %s5197_s11 = scalar_lea.vmem %s203_s24, 32 }
  0x90   :  { %p5194_p7 = scmp.ne.s32.totalorder %s203_s24, %s5193_s10  ;;  %p5198_p8 = scmp.lt.s32.totalorder %s203_s24, %s203_s24 }
  0x91   :  { %p5199_p9 = scmp.lt.s32.totalorder %s5197_s11, %s5193_s10 }
  0x93   :  { %p5200_p10 = por %p5199_p9, %p5198_p8 }
  0x95   :  { %p5201_p11 = pnand %p5200_p10, %p5194_p7 }
  0x97   :  { %5204 = shalt.err (!%p5201_p11)
}
  0x98   :  { %205 = dma.hbm_to_vmem [thread:$0]  %s5584_s21, 16, %s203_s24, [#allocation18]  }
  0x99   :  { %s5205_s12 = scalar_lea.hbm %s5504_s13, 128 }
  0x9a   :  { %p5206_p12 = scmp.ne.s32.totalorder %s5504_s13, %s5205_s12  ;;  %p5209_p13 = scmp.lt.u32.totalorder %s5205_s12, %s5504_s13 }
  0x9c   :  { %p5211_p0 = pnand %p5209_p13, %p5206_p12 }
  0x9e   :  { %5214 = shalt.err (!%p5211_p0)
}
  0x9f   :  { %s5215_s15 = scalar_lea.vmem %s5693_s7, 128  ;;  %p5220_p2 = scmp.lt.s32.totalorder %s5693_s7, %s5693_s7 }
  0xa0   :  { %p5216_p1 = scmp.ne.s32.totalorder %s5693_s7, %s5215_s15  ;;  %p5221_p3 = scmp.lt.s32.totalorder %s5215_s15, %s5215_s15 }
  0xa2   :  { %p5222_p4 = por %p5221_p3, %p5220_p2 }
  0xa4   :  { %p5223_p5 = pnand %p5222_p4, %p5216_p1 }
  0xa6   :  { %5226 = shalt.err (!%p5223_p5)
}
  0xa7   :  { %99 = dma.hbm_to_vmem [thread:$0]  %s5504_s13, 128, %s5693_s7, [#allocation3], %s5457_s26, %s5457_s26, %s5458_s28  }
  0xa8   :  { %s5463_s21 = smov [#allocation7]   ;;  %s5464_s18 = smov [#allocation10]  }
  0xa9   :  { %s122_s16 = sshll.u32 %s5463_s21, 4  ;;  %s146_s0 = sshll.u32 %s5464_s18, 4  ;;  %s123_s16 = int_to_ptr.vmem [resolvable:$true] %s122_s16  ;;  %s147_s0 = int_to_ptr.vmem [resolvable:$true] %s146_s0 }
  0xaa   :  { %s5227_s8 = scalar_lea.hbm %s5524_s29, 16 }
  0xab   :  { %p5228_p6 = scmp.ne.s32.totalorder %s5524_s29, %s5227_s8  ;;  %p5231_p7 = scmp.lt.u32.totalorder %s5227_s8, %s5524_s29 }
  0xad   :  { %p5233_p8 = pnand %p5231_p7, %p5228_p6 }
  0xaf   :  { %5236 = shalt.err (!%p5233_p8)
}
  0xb0   :  { %s5237_s22 = scalar_lea.vmem %s123_s16, 16  ;;  %s5241_s23 = scalar_lea.vmem %s123_s16, 32 }
  0xb1   :  { %p5238_p9 = scmp.ne.s32.totalorder %s123_s16, %s5237_s22  ;;  %p5242_p10 = scmp.lt.s32.totalorder %s123_s16, %s123_s16 }
  0xb2   :  { %p5243_p11 = scmp.lt.s32.totalorder %s5241_s23, %s5237_s22 }
  0xb4   :  { %p5244_p12 = por %p5243_p11, %p5242_p10 }
  0xb6   :  { %p5245_p13 = pnand %p5244_p12, %p5238_p9 }
  0xb8   :  { %5248 = shalt.err (!%p5245_p13)
}
  0xb9   :  { %125 = dma.hbm_to_vmem [thread:$0]  %s5524_s29, 16, %s123_s16, [#allocation6]  }
  0xba   :  { %s5249_s13 = scalar_lea.hbm %s5544_s19, 16 }
  0xbb   :  { %p5250_p0 = scmp.ne.s32.totalorder %s5544_s19, %s5249_s13  ;;  %p5253_p1 = scmp.lt.u32.totalorder %s5249_s13, %s5544_s19 }
  0xbd   :  { %p5255_p2 = pnand %p5253_p1, %p5250_p0 }
  0xbf   :  { %5258 = shalt.err (!%p5255_p2)
}
  0xc0   :  { %s5259_s28 = scalar_lea.vmem %s147_s0, 16  ;;  %s5263_s1 = scalar_lea.vmem %s147_s0, 32 }
  0xc1   :  { %p5260_p3 = scmp.ne.s32.totalorder %s147_s0, %s5259_s28  ;;  %p5264_p4 = scmp.lt.s32.totalorder %s147_s0, %s147_s0 }
  0xc2   :  { %p5265_p5 = scmp.lt.s32.totalorder %s5263_s1, %s5259_s28 }
  0xc4   :  { %p5266_p6 = por %p5265_p5, %p5264_p4 }
  0xc6   :  { %p5267_p7 = pnand %p5266_p6, %p5260_p3 }
  0xc8   :  { %5270 = shalt.err (!%p5267_p7)
}
  0xc9   :  { %149 = dma.hbm_to_vmem [thread:$0]  %s5544_s19, 16, %s147_s0, [#allocation9]  }
  0xca   :  { %s5465_s24 = smov [#allocation13]   ;;  %s5466_s2 = smov [#allocation16]  }
  0xcb   :  { %s166_s29 = sshll.u32 %s5465_s24, 4  ;;  %s190_s7 = sshll.u32 %s5466_s2, 4  ;;  %s167_s29 = int_to_ptr.vmem [resolvable:$true] %s166_s29  ;;  %s191_s7 = int_to_ptr.vmem [resolvable:$true] %s190_s7 }
  0xcc   :  { %s5271_s17 = scalar_lea.hbm %s5554_s30, 16 }
  0xcd   :  { %p5272_p8 = scmp.ne.s32.totalorder %s5554_s30, %s5271_s17  ;;  %p5275_p9 = scmp.lt.u32.totalorder %s5271_s17, %s5554_s30 }
  0xcf   :  { %p5277_p10 = pnand %p5275_p9, %p5272_p8 }
  0xd1   :  { %5280 = shalt.err (!%p5277_p10)
}
  0xd2   :  { %s5281_s10 = scalar_lea.vmem %s167_s29, 16  ;;  %s5285_s11 = scalar_lea.vmem %s167_s29, 32 }
  0xd3   :  { %p5282_p11 = scmp.ne.s32.totalorder %s167_s29, %s5281_s10  ;;  %p5286_p12 = scmp.lt.s32.totalorder %s167_s29, %s167_s29 }
  0xd4   :  { %p5287_p13 = scmp.lt.s32.totalorder %s5285_s11, %s5281_s10 }
  0xd6   :  { %p5288_p0 = por %p5287_p13, %p5286_p12 }
  0xd8   :  { %p5289_p1 = pnand %p5288_p0, %p5282_p11 }
  0xda   :  { %5292 = shalt.err (!%p5289_p1)
}
  0xdb   :  { %169 = dma.hbm_to_vmem [thread:$0]  %s5554_s30, 16, %s167_s29, [#allocation12]  }
  0xdc   :  { %s5293_s19 = scalar_lea.hbm %s5574_s27, 16 }
  0xdd   :  { %p5294_p2 = scmp.ne.s32.totalorder %s5574_s27, %s5293_s19  ;;  %p5297_p3 = scmp.lt.u32.totalorder %s5293_s19, %s5574_s27 }
  0xdf   :  { %p5299_p4 = pnand %p5297_p3, %p5294_p2 }
  0xe1   :  { %5302 = shalt.err (!%p5299_p4)
}
  0xe2   :  { %s5303_s12 = scalar_lea.vmem %s191_s7, 16  ;;  %s5307_s15 = scalar_lea.vmem %s191_s7, 32 }
  0xe3   :  { %p5304_p5 = scmp.ne.s32.totalorder %s191_s7, %s5303_s12  ;;  %p5308_p6 = scmp.lt.s32.totalorder %s191_s7, %s191_s7 }
  0xe4   :  { %p5309_p7 = scmp.lt.s32.totalorder %s5307_s15, %s5303_s12 }
  0xe6   :  { %p5310_p8 = por %p5309_p7, %p5308_p6 }
  0xe8   :  { %p5311_p9 = pnand %p5310_p8, %p5304_p5 }
  0xea   :  { %5314 = shalt.err (!%p5311_p9)
}
  0xeb   :  { %193 = dma.hbm_to_vmem [thread:$0]  %s5574_s27, 16, %s191_s7, [#allocation15]  }
  0xec   :  { %s5467_s21 = smov [#allocation19]   ;;  %s5468_s16 = smov [#allocation20]  }
  0xed   :  { %s212_s30 = sshll.u32 %s5467_s21, 4  ;;  %s222_s18 = sshll.u32 %s5468_s16, 4  ;;  %s213_s30 = int_to_ptr.vmem [resolvable:$true] %s212_s30  ;;  %s223_s18 = int_to_ptr.vmem [resolvable:$true] %s222_s18 }
  0xee   :  { %s5315_s0 = scalar_lea.hbm %s5589_s20, 16 }
  0xef   :  { %p5316_p10 = scmp.ne.s32.totalorder %s5589_s20, %s5315_s0  ;;  %p5319_p11 = scmp.lt.u32.totalorder %s5315_s0, %s5589_s20 }
  0xf1   :  { %p5321_p12 = pnand %p5319_p11, %p5316_p10 }
  0xf3   :  { %5324 = shalt.err (!%p5321_p12)
}
  0xf4   :  { %s5325_s8 = scalar_lea.vmem %s213_s30, 16  ;;  %s5329_s22 = scalar_lea.vmem %s213_s30, 32 }
  0xf5   :  { %p5326_p13 = scmp.ne.s32.totalorder %s213_s30, %s5325_s8  ;;  %p5330_p0 = scmp.lt.s32.totalorder %s213_s30, %s213_s30 }
  0xf6   :  { %p5331_p1 = scmp.lt.s32.totalorder %s5329_s22, %s5325_s8 }
  0xf8   :  { %p5332_p2 = por %p5331_p1, %p5330_p0 }
  0xfa   :  { %p5333_p3 = pnand %p5332_p2, %p5326_p13 }
  0xfc   :  { %5336 = shalt.err (!%p5333_p3)
}
  0xfd   :  { %215 = dma.hbm_to_vmem [thread:$0]  %s5589_s20, 16, %s213_s30, [#allocation18]  }
  0xfe   :  { %s5337_s27 = scalar_lea.hbm %s5594_s9, 16 }
  0xff   :  { %p5338_p4 = scmp.ne.s32.totalorder %s5594_s9, %s5337_s27  ;;  %p5341_p5 = scmp.lt.u32.totalorder %s5337_s27, %s5594_s9 }
 0x101   :  { %p5343_p6 = pnand %p5341_p5, %p5338_p4 }
 0x103   :  { %5346 = shalt.err (!%p5343_p6)
}
 0x104   :  { %s5347_s23 = scalar_lea.vmem %s223_s18, 16  ;;  %s5351_s13 = scalar_lea.vmem %s223_s18, 32 }
 0x105   :  { %p5348_p7 = scmp.ne.s32.totalorder %s223_s18, %s5347_s23  ;;  %p5352_p8 = scmp.lt.s32.totalorder %s223_s18, %s223_s18 }
 0x106   :  { %p5353_p9 = scmp.lt.s32.totalorder %s5351_s13, %s5347_s23 }
 0x108   :  { %p5354_p10 = por %p5353_p9, %p5352_p8 }
 0x10a   :  { %p5355_p11 = pnand %p5354_p10, %p5348_p7 }
 0x10c   :  { %5358 = shalt.err (!%p5355_p11)
}
 0x10d   :  { %225 = dma.hbm_to_vmem [thread:$0]  %s5594_s9, 16, %s223_s18, [#allocation21]  }
 0x10e   :  { %5403 = dma.done.wait [#allocation3], 128  }
 0x10f   :  { %5404 = vsyncadd [#allocation3], 4294967168 }
 0x110   :  { %5405 = dma.done.wait [#allocation6], 144  }
 0x111   :  { %5406 = vsyncadd [#allocation6], 4294967152 }
 0x112   :  { %5407 = dma.done.wait [#allocation9], 32  }
 0x113   :  { %5408 = vsyncadd [#allocation9], 4294967264 }
 0x114   :  { %5409 = dma.done.wait [#allocation12], 32  }
 0x115   :  { %5410 = vsyncadd [#allocation12], 4294967264 }
 0x116   :  { %5411 = dma.done.wait [#allocation15], 32  }
 0x117   :  { %5412 = vsyncadd [#allocation15], 4294967264 }
 0x118   :  { %5413 = dma.done.wait [#allocation18], 32  }
 0x119   :  { %5414 = vsyncadd [#allocation18], 4294967264 }
 0x11a   :  { %5415 = dma.done.wait [#allocation21], 16  }
 0x11b   :  { %5416 = vsyncadd [#allocation21], 4294967280  ;;  %vm314_vm0 = vcmask 261120   ;;  %v298_v0 = vld [vmem:[%s5519_s25] sm:$0xff]  ;;  %v299_v1 = vld [vmem:[%s5519_s25 + $0x8] sm:$0xff]  ;;  %v5469_v10 = vmov 0.0  }
 0x11c   :  { %v300_v2 = vld [vmem:[%s5519_s25 + $0x10] sm:$0xff]  ;;  %v4858_v3 = vpack.c.bf16 %v299_v1, %v298_v0  ;;  %v301_v4 = vld [vmem:[%s5519_s25 + $0x18] sm:$0xff]  ;;  %v286_v5 = vld [vmem:[%s5494_s5] sm:$0xff]  ;;  %4604 = vmatprep.subr.mxu1 %v5469_v10  ;;  %s5470_s9 = smov 112   ;;  %s5471_s25 = smov 120   ;;  %vm5472_vm1 = vmmov 0  }
 0x11d   :  { %v4862_v6 = vpack.c.bf16 %v301_v4, %v300_v2  ;;  %4596 = vmatprep.mubr.msk.f32.mxu0 %vm314_vm0, %v286_v5  ;;  %v287_v7 = vld [vmem:[%s5494_s5 + $0x8] sm:$0xff]  ;;  %v4362_v8 = vld [vmem:[#allocation7] ss:$0 sm:$0xff]  ;;  %4606 = vmatprep.mubr.msk.f32.mxu1 %vm5472_vm1, %v5469_v10  ;;  %s5473_s20 = smov 104   ;;  %s5474_s28 = smov 96   ;;  %vm474_vm2 = vcmask 64512  }
 0x11e   :  { %4859 = vmatprep.subr.bf16.mxu0 %v4858_v3  ;;  %v4366_v36 = vld [vmem:[#allocation2 + $0x1] ss:$0 sm:$0xff]  ;;  %v4365_v37 = vld [vmem:[#allocation2] ss:$0 sm:$0xff]  ;;  %v4367_v46 = vld [vmem:[#allocation2 + $0x2] ss:$0 sm:$0xff] }
 0x11f   :  { %4861 = vmatpush3.bf16.msra.mxu0 %v4858_v3  ;;  %v4368_v50 = vld [vmem:[#allocation2 + $0x3] ss:$0 sm:$0xff]  ;;  %v4369_v51 = vld [vmem:[#allocation2 + $0x4] ss:$0 sm:$0xff]  ;;  %v4370_v59 = vld [vmem:[#allocation2 + $0x5] ss:$0 sm:$0xff] }
 0x120   :  { %4863 = vmatprep.subr.bf16.mxu0 %v4862_v6  ;;  %v4371_v60 = vld [vmem:[#allocation2 + $0x6] ss:$0 sm:$0xff]  ;;  %v4372_v5 = vld [vmem:[#allocation2 + $0x7] ss:$0 sm:$0xff]  ;;  %s5475_s1 = smov 64   ;;  %s6240_s24 = sld [smem:[#allocation36_spill]] }
 0x121   :  { %s6241_s29 = sld [smem:[#allocation38_spill]]  ;;  %s6242_s2 = sld [smem:[#allocation37_spill]]  ;;  %vm1811_vm3 = vcmask 130048   ;;  %vm1814_vm4 = vcmask 195584   ;;  %vm2222_vm5 = vcmask 31744   ;;  %vm3561_vm6 = vcmask 97280  }
 0x122   :  { %s5476_s7 = smov 8   ;;  %s5477_s17 = smov 24   ;;  %vm4023_vm7 = vcmask 523264  }
 0x123   :  { %4865 = vmatpush3.bf16.msra.mxu0 %v4862_v6  ;;  %s6243_s10 = sld [smem:[#allocation34_spill]]  ;;  %s5479_s11 = smov 116  }
 0x124   :  { %4599 = vmatprep.subr.mxu0 %v5469_v10  ;;  %s6244_s19 = sld [smem:[#allocation39_spill]]  ;;  %s5480_s12 = smov 4  }
 0x125   :  { %s5481_s15 = smov 12   ;;  %s6245_s21 = sld [smem:[#allocation40_spill]] }
 0x126   :  { %4597 = vmatmul.mubr.msk.f32.vlgmr.msra.gmra.mrb[0].mxu0 %vm314_vm0, %v287_v7  ;;  %s6247_s30 = sld [smem:[#allocation35_spill]]  ;;  %s6249_s18 = sld [smem:[#allocation45_spill]] }
 0x127   :  { %4601 = vmatprep.mubr.msk.f32.mxu0 %vm5472_vm1, %v5469_v10  ;;  %s6248_s16 = sld [smem:[#allocation43_spill]]  ;;  %s6250_s0 = sld [smem:[#allocation49_spill]] }
 0x128   :  { %s6251_s8 = sld [smem:[#allocation42_spill]]  ;;  %s6252_s22 = sld [smem:[#allocation44_spill]] }
 0x129   :  { %s6253_s27 = sld [smem:[#allocation46_spill]]  ;;  %s6254_s23 = sld [smem:[#allocation50_spill]] }
 0x12a   :  { %s6255_s13 = sld [smem:[#allocation47_spill]] }
 0x1f9   :  { %v4598_v9 = vpop.f32.mrb[0].mxu0 }
 0x1fa   :  { %v387_v11 = vpop.f32.mrb[1].mxu0  ;;  %v5755_v13 = vadd.f32 %v4598_v9, %v4362_v8 }
 0x1fb   :  { %v5745_v12 = vadd.f32 %v4362_v8, %v387_v11 }
 0x1fc   :  { %v417_v22 = vmul.f32 0.35355338, %v5755_v13 }
 0x1fd   :  { %404 = vrot.lane.b32.xlu1 %v5745_v12, %s5470_s9  ;;  %398 = vrot.lane.b32.xlu0 %v5745_v12, %s5471_s25  ;;  %v416_v23 = vmul.f32 0.35355338, %v5745_v12 }
 0x201   :  { %406 = vrot.lane.b32.xlu1 %v5755_v13, %s5470_s9  ;;  %400 = vrot.lane.b32.xlu0 %v5755_v13, %s5471_s25 }
 0x205   :  { %412 = vrot.lane.b32.xlu1 %v5755_v13, %s5473_s20  ;;  %410 = vrot.lane.b32.xlu0 %v5745_v12, %s5473_s20 }
 0x209   :  { %550 = vrot.lane.b32.xlu1 %v5755_v13, %s5474_s28  ;;  %472 = vrot.lane.b32.xlu0 %v5745_v12, %s5474_s28 }
 0x26f   :  { %v5767_v14 = vpop.permute.xlu1 %404  ;;  %v5769_v15 = vpop.permute.xlu0 %398 }
 0x270   :  { %627 = vrot.lane.b32.xlu0 %v5769_v15, %s5474_s28  ;;  %v418_v25 = vmul.f32 0.35355338, %v5769_v15  ;;  %v420_v28 = vmul.f32 0.35355338, %v5767_v14 }
 0x273   :  { %v5773_v16 = vpop.permute.xlu1 %406  ;;  %v5775_v17 = vpop.permute.xlu0 %400 }
 0x274   :  { %781 = vrot.lane.b32.xlu0 %v5767_v14, %s5474_s28  ;;  %704 = vrot.lane.b32.xlu1 %v5775_v17, %s5474_s28  ;;  %v419_v29 = vmul.f32 0.35355338, %v5775_v17  ;;  %v421_v32 = vmul.f32 0.35355338, %v5773_v16 }
 0x277   :  { %v5781_v18 = vpop.permute.xlu1 %412  ;;  %v5783_v19 = vpop.permute.xlu0 %410 }
 0x278   :  { %858 = vrot.lane.b32.xlu1 %v5773_v16, %s5474_s28  ;;  %935 = vrot.lane.b32.xlu0 %v5783_v19, %s5474_s28  ;;  %v422_v33 = vmul.f32 0.35355338, %v5783_v19  ;;  %v423_v35 = vmul.f32 0.35355338, %v5781_v18 }
 0x27b   :  { %v551_v20 = vpop.permute.xlu1 %550  ;;  %v473_v21 = vpop.permute.xlu0 %472 }
 0x27c   :  { %4605 = vmatpush3.xpose.msk.msra.mxu1 %vm474_vm2, %v551_v20  ;;  %1012 = vrot.lane.b32.xlu1 %v5781_v18, %s5474_s28 }
 0x27d   :  { %4600 = vmatpush3.xpose.msk.msra.mxu0 %vm474_vm2, %v473_v21  ;;  %4614 = vmatprep.subr.mxu1 %v5469_v10 }
 0x27e   :  { %4609 = vmatprep.subr.mxu0 %v5469_v10 }
 0x27f   :  { %4607 = vmatmul.mubr.msk.f32.vlgmr.msra.gmra.mrb[0].mxu1 %vm474_vm2, %v417_v22 }
 0x280   :  { %4602 = vmatmul.mubr.msk.f32.vlgmr.msra.gmra.mrb[2].mxu0 %vm474_vm2, %v416_v23  ;;  %4616 = vmatprep.mubr.msk.f32.mxu1 %vm5472_vm1, %v5469_v10 }
 0x281   :  { %4611 = vmatprep.mubr.msk.f32.mxu0 %vm5472_vm1, %v5469_v10 }
 0x2e2   :  { %v628_v24 = vpop.permute.xlu0 %627 }
 0x2e3   :  { %4610 = vmatpush3.xpose.msk.msra.mxu0 %vm474_vm2, %v628_v24 }
 0x2e4   :  { %4619 = vmatprep.subr.mxu0 %v5469_v10 }
 0x2e6   :  { %v705_v26 = vpop.permute.xlu1 %704  ;;  %v782_v27 = vpop.permute.xlu0 %781  ;;  %4612 = vmatmul.mubr.msk.f32.vlgmr.msra.gmra.mrb[4].mxu0 %vm474_vm2, %v418_v25 }
 0x2e7   :  { %4615 = vmatpush3.xpose.msk.msra.mxu1 %vm474_vm2, %v705_v26  ;;  %4620 = vmatpush3.xpose.msk.msra.mxu0 %vm474_vm2, %v782_v27 }
 0x2e8   :  { %4621 = vmatprep.mubr.msk.f32.mxu0 %vm5472_vm1, %v5469_v10  ;;  %4624 = vmatprep.subr.mxu1 %v5469_v10 }
 0x2e9   :  { %4629 = vmatprep.subr.mxu0 %v5469_v10 }
 0x2ea   :  { %4617 = vmatmul.mubr.msk.f32.vlgmr.msra.gmra.mrb[2].mxu1 %vm474_vm2, %v419_v29  ;;  %v859_v30 = vpop.permute.xlu1 %858  ;;  %v936_v31 = vpop.permute.xlu0 %935  ;;  %4622 = vmatmul.mubr.msk.f32.vlgmr.msra.gmra.mrb[6].mxu0 %vm474_vm2, %v420_v28 }
 0x2eb   :  { %4625 = vmatpush3.xpose.msk.msra.mxu1 %vm474_vm2, %v859_v30  ;;  %4630 = vmatpush3.xpose.msk.msra.mxu0 %vm474_vm2, %v936_v31 }
 0x2ec   :  { %4626 = vmatprep.mubr.msk.f32.mxu1 %vm5472_vm1, %v5469_v10  ;;  %4631 = vmatprep.mubr.msk.f32.mxu0 %vm5472_vm1, %v5469_v10 }
 0x2ed   :  { %4634 = vmatprep.subr.mxu1 %v5469_v10  ;;  %4639 = vmatprep.subr.mxu0 %v5469_v10 }
 0x2ee   :  { %4627 = vmatmul.mubr.msk.f32.vlgmr.msra.gmra.mrb[4].mxu1 %vm474_vm2, %v421_v32  ;;  %v1013_v34 = vpop.permute.xlu1 %1012  ;;  %4632 = vmatmul.mubr.msk.f32.vlgmr.msra.gmra.mrb[8].mxu0 %vm474_vm2, %v422_v33 }
 0x2ef   :  { %4635 = vmatpush3.xpose.msk.msra.mxu1 %vm474_vm2, %v1013_v34  ;;  %4636 = vmatprep.mubr.msk.f32.mxu1 %vm5472_vm1, %v5469_v10 }
 0x2f0   :  { %4644 = vmatprep.subr.mxu1 %v5469_v10  ;;  %4641 = vmatprep.mubr.msk.f32.mxu0 %vm5472_vm1, %v5469_v10 }
 0x2f2   :  { %4637 = vmatmul.mubr.msk.f32.vlgmr.msra.gmra.mrb[6].mxu1 %vm474_vm2, %v423_v35 }
 0x2f3   :  { %4646 = vmatprep.mubr.msk.f32.mxu1 %vm5472_vm1, %v5469_v10 }
 0x352   :  { %v623_v38 = vpop.f32.mrb[0].mxu1 }
 0x353   :  { %v546_v39 = vpop.f32.mrb[2].mxu0  ;;  %v624_v40 = vadd.f32 %v4366_v36, %v623_v38  ;;  %v4608_v41 = vpop.f32.mrb[1].mxu1 }
 0x354   :  { %v547_v42 = vadd.f32 %v4365_v37, %v546_v39  ;;  %v4603_v43 = vpop.f32.mrb[3].mxu0 }
 0x355   :  { %v1092_v44 = vsel %vm474_vm2, %v624_v40, -inf }
 0x356   :  { %1093 = vmax.xlane.f32.xlu1 %v1092_v44  ;;  %v1089_v45 = vsel %vm474_vm2, %v547_v42, -inf }
 0x357   :  { %1090 = vmax.xlane.f32.xlu0 %v1089_v45 }
 0x3b9   :  { %v700_v47 = vpop.f32.mrb[4].mxu0 }
 0x3ba   :  { %v701_v48 = vadd.f32 %v4367_v46, %v700_v47  ;;  %v4613_v49 = vpop.f32.mrb[5].mxu0 }
 0x3bc   :  { %v1095_v52 = vsel %vm474_vm2, %v701_v48, -inf }
 0x3bd   :  { %v777_v53 = vpop.f32.mrb[2].mxu1  ;;  %1096 = vmax.xlane.f32.xlu0 %v1095_v52  ;;  %v854_v54 = vpop.f32.mrb[6].mxu0 }
 0x3be   :  { %v778_v55 = vadd.f32 %v4368_v50, %v777_v53  ;;  %v855_v56 = vadd.f32 %v4369_v51, %v854_v54  ;;  %v4618_v57 = vpop.f32.mrb[3].mxu1  ;;  %v4623_v58 = vpop.f32.mrb[7].mxu0 }
 0x3c0   :  { %v1098_v61 = vsel %vm474_vm2, %v778_v55, -inf  ;;  %v1101_v62 = vsel %vm474_vm2, %v855_v56, -inf }
 0x3c1   :  { %v931_v63 = vpop.f32.mrb[4].mxu1  ;;  %1099 = vmax.xlane.f32.xlu0 %v1098_v61  ;;  %1102 = vmax.xlane.f32.xlu1 %v1101_v62  ;;  %v1008_v0 = vpop.f32.mrb[8].mxu0 }
 0x3c2   :  { %v932_v1 = vadd.f32 %v4370_v59, %v931_v63  ;;  %v1009_v2 = vadd.f32 %v4371_v60, %v1008_v0  ;;  %v4628_v3 = vpop.f32.mrb[5].mxu1  ;;  %v4633_v4 = vpop.f32.mrb[9].mxu0 }
 0x3c4   :  { %v1104_v6 = vsel %vm474_vm2, %v932_v1, -inf  ;;  %v1107_v7 = vsel %vm474_vm2, %v1009_v2, -inf }
 0x3c5   :  { %v1085_v8 = vpop.f32.mrb[6].mxu1  ;;  %1105 = vmax.xlane.f32.xlu0 %v1104_v6  ;;  %1108 = vmax.xlane.f32.xlu1 %v1107_v7 }
 0x3c6   :  { %v1086_v9 = vadd.f32 %v4372_v5, %v1085_v8  ;;  %v4638_v11 = vpop.f32.mrb[7].mxu1 }
 0x3c8   :  { %v1110_v20 = vsel %vm474_vm2, %v1086_v9, -inf }
 0x3c9   :  { %1111 = vmax.xlane.f32.xlu0 %v1110_v20 }
 0x3d6   :  { %1177 = vrot.lane.b32.xlu1 %v5745_v12, %s5475_s1 }
 0x3da   :  { %1329 = vrot.lane.b32.xlu1 %v5769_v15, %s5475_s1 }
 0x3de   :  { %1405 = vrot.lane.b32.xlu1 %v5775_v17, %s5475_s1 }
 0x3df   :  { %1253 = vrot.lane.b32.xlu0 %v5755_v13, %s5475_s1 }
 0x3e2   :  { %1557 = vrot.lane.b32.xlu1 %v5773_v16, %s5475_s1 }
 0x3e3   :  { %1481 = vrot.lane.b32.xlu0 %v5767_v14, %s5475_s1  ;;  %v1094_v21 = vpop.xlane.xlu1 %1093 }
 0x3e4   :  { %v1114_v22 = vsub.f32 %v624_v40, %v1094_v21  ;;  %v1091_v23 = vpop.xlane.xlu0 %1090 }
 0x3e5   :  { %v1113_v12 = vsub.f32 %v547_v42, %v1091_v23 }
 0x3e6   :  { %v1123_v24 = vmul.f32 1.442695, %v1114_v22 }
 0x3e7   :  { %v1121_v25 = vmul.f32 1.442695, %v1113_v12 }
 0x3e8   :  { %5009 = vpow2.f32 %v1123_v24 }
 0x3e9   :  { %5011 = vpow2.f32 %v1121_v25 }
 0x3f2   :  { %v5859_v15 = vpop.eup %5009 }
 0x3f3   :  { %v1140_v17 = vsel %vm474_vm2, %v5859_v15, 0.0  ;;  %v5863_v13 = vpop.eup %5011 }
 0x3f4   :  { %v1137_v16 = vsel %vm474_vm2, %v5863_v13, 0.0 }
 0x402   :  { %1141 = vadd.xlane.f32.xlu0 %v1140_v17 }
 0x406   :  { %1138 = vadd.xlane.f32.xlu1 %v1137_v16 }
 0x44a   :  { %v1097_v14 = vpop.xlane.xlu0 %1096 }
 0x44b   :  { %v1115_v26 = vsub.f32 %v701_v48, %v1097_v14 }
 0x44d   :  { %v1125_v27 = vmul.f32 1.442695, %v1115_v26 }
 0x44e   :  { %v1100_v28 = vpop.xlane.xlu0 %1099  ;;  %v1103_v29 = vpop.xlane.xlu1 %1102 }
 0x44f   :  { %5013 = vpow2.f32 %v1125_v27  ;;  %v1116_v30 = vsub.f32 %v778_v55, %v1100_v28  ;;  %v1117_v31 = vsub.f32 %v855_v56, %v1103_v29  ;;  %v303_v28 = vld [vmem:[%s6240_s24] sm:$0xff]  ;;  %v304_v29 = vld [vmem:[%s6240_s24 + $0x8] sm:$0xff] }
 0x451   :  { %v1127_v32 = vmul.f32 1.442695, %v1116_v30  ;;  %v1129_v33 = vmul.f32 1.442695, %v1117_v31  ;;  %v4866_v30 = vpack.c.bf16 %v304_v29, %v303_v28  ;;  %v305_v31 = vld [vmem:[%s6240_s24 + $0x10] sm:$0xff] }
 0x452   :  { %v1106_v34 = vpop.xlane.xlu0 %1105  ;;  %v1109_v35 = vpop.xlane.xlu1 %1108 }
 0x453   :  { %5015 = vpow2.f32 %v1127_v32  ;;  %v1118_v36 = vsub.f32 %v932_v1, %v1106_v34  ;;  %v1119_v37 = vsub.f32 %v1009_v2, %v1109_v35  ;;  %v306_v32 = vld [vmem:[%s6240_s24 + $0x18] sm:$0xff]  ;;  %v2051_v35 = vld [vmem:[%s6241_s29] sm:$0xff] }
 0x454   :  { %5017 = vpow2.f32 %v1129_v33  ;;  %v4870_v33 = vpack.c.bf16 %v306_v32, %v305_v31 }
 0x455   :  { %v1131_v38 = vmul.f32 1.442695, %v1118_v36  ;;  %v1133_v39 = vmul.f32 1.442695, %v1119_v37  ;;  %v2052_v36 = vld [vmem:[%s6241_s29 + $0x8] sm:$0xff] }
 0x456   :  { %v1112_v40 = vpop.xlane.xlu0 %1111  ;;  %v1178_v41 = vpop.permute.xlu1 %1177 }
 0x457   :  { %5019 = vpow2.f32 %v1131_v38  ;;  %v1120_v42 = vsub.f32 %v1086_v9, %v1112_v40  ;;  %4640 = vmatpush3.msra.mxu0 %v1178_v41  ;;  %v4882_v38 = vpack.c.bf16 %v2052_v36, %v2051_v35 }
 0x458   :  { %5021 = vpow2.f32 %v1133_v39  ;;  %4649 = vmatprep.subr.mxu0 %v5469_v10 }
 0x459   :  { %v5014_v43 = vpop.eup %5013  ;;  %v1135_v44 = vmul.f32 1.442695, %v1120_v42  ;;  %v1904_v42 = vld [vmem:[%s6242_s2] sm:$0xff] }
 0x45a   :  { %v1254_v45 = vpop.permute.xlu0 %1253  ;;  %v1143_v46 = vsel %vm474_vm2, %v5014_v43, 0.0  ;;  %v1330_v57 = vpop.permute.xlu1 %1329 }
 0x45b   :  { %5023 = vpow2.f32 %v1135_v44  ;;  %4645 = vmatpush3.msra.mxu1 %v1254_v45  ;;  %1144 = vadd.xlane.f32.xlu1 %v1143_v46 }
 0x45c   :  { %4654 = vmatprep.subr.mxu1 %v5469_v10 }
 0x45d   :  { %v5016_v47 = vpop.eup %5015 }
 0x45e   :  { %v5018_v48 = vpop.eup %5017  ;;  %v1146_v49 = vsel %vm474_vm2, %v5016_v47, 0.0  ;;  %v1406_v58 = vpop.permute.xlu1 %1405 }
 0x45f   :  { %1147 = vadd.xlane.f32.xlu0 %v1146_v49  ;;  %v1149_v50 = vsel %vm474_vm2, %v5018_v48, 0.0  ;;  %v1482_v59 = vpop.permute.xlu0 %1481 }
 0x460   :  { %1150 = vadd.xlane.f32.xlu1 %v1149_v50 }
 0x461   :  { %v5020_v51 = vpop.eup %5019 }
 0x462   :  { %v5022_v52 = vpop.eup %5021  ;;  %v1152_v53 = vsel %vm474_vm2, %v5020_v51, 0.0  ;;  %v1558_v60 = vpop.permute.xlu1 %1557 }
 0x463   :  { %1153 = vadd.xlane.f32.xlu0 %v1152_v53  ;;  %v1155_v54 = vsel %vm474_vm2, %v5022_v52, 0.0 }
 0x464   :  { %1156 = vadd.xlane.f32.xlu1 %v1155_v54 }
 0x465   :  { %v5874_v55 = vpop.eup %5023 }
 0x466   :  { %v1158_v56 = vsel %vm474_vm2, %v5874_v55, 0.0 }
 0x467   :  { %1159 = vadd.xlane.f32.xlu0 %v1158_v56 }
 0x475   :  { %1709 = vrot.lane.b32.xlu1 %v5781_v18, %s5475_s1 }
 0x47d   :  { %1633 = vrot.lane.b32.xlu0 %v5783_v19, %s5475_s1 }
 0x48f   :  { %v1142_v61 = vpop.xlane.xlu0 %1141 }
 0x490   :  { %5025 = vrcp.f32 %v1142_v61 }
 0x493   :  { %v1139_v62 = vpop.xlane.xlu1 %1138 }
 0x494   :  { %5027 = vrcp.f32 %v1139_v62 }
 0x49a   :  { %v5026_v63 = vpop.eup %5025 }
 0x49b   :  { %v1170_v0 = vmul.f32 %v5026_v63, %v5859_v15  ;;  %v5927_v63 = vld [vmem:[%s6243_s10] sm:$0xff] }
 0x49d   :  { %4647 = vmatmul.mubr.msk.f32.vlgmr.msra.gmra.mrb[8].mxu1 %vm474_vm2, %v1170_v0 }
 0x49e   :  { %v5028_v1 = vpop.eup %5027  ;;  %4655 = vmatpush3.msra.mxu1 %v1406_v58  ;;  %4656 = vmatprep.mubr.msk.f32.mxu1 %vm5472_vm1, %v5469_v10 }
 0x49f   :  { %v1169_v18 = vmul.f32 %v5028_v1, %v5863_v13  ;;  %4664 = vmatprep.subr.mxu1 %v5469_v10  ;;  %v5933_v1 = vld [vmem:[%s6243_s10 + $0x8] sm:$0xff] }
 0x4a1   :  { %4642 = vmatmul.mubr.msk.f32.vlgmr.msra.gmra.mrb[10].mxu0 %vm474_vm2, %v1169_v18  ;;  %v1906_v18 = vld [vmem:[%s6242_s2 + $0x10] sm:$0xff] }
 0x4a2   :  { %4650 = vmatpush3.msra.mxu0 %v1330_v57  ;;  %4651 = vmatprep.mubr.msk.f32.mxu0 %vm5472_vm1, %v5469_v10 }
 0x4a3   :  { %4659 = vmatprep.subr.mxu0 %v5469_v10 }
 0x4e8   :  { %v1145_v19 = vpop.xlane.xlu1 %1144 }
 0x4e9   :  { %5029 = vrcp.f32 %v1145_v19  ;;  %v1907_v19 = vld [vmem:[%s6242_s2 + $0x18] sm:$0xff] }
 0x4ec   :  { %v1148_v2 = vpop.xlane.xlu0 %1147 }
 0x4ed   :  { %5031 = vrcp.f32 %v1148_v2  ;;  %v1151_v3 = vpop.xlane.xlu1 %1150  ;;  %v4878_v2 = vpack.c.bf16 %v1907_v19, %v1906_v18 }
 0x4ee   :  { %5033 = vrcp.f32 %v1151_v3  ;;  %v4397_v3 = vld [vmem:[#allocation8] ss:$0 sm:$0xff] }
 0x4f0   :  { %v1154_v4 = vpop.xlane.xlu0 %1153 }
 0x4f1   :  { %5035 = vrcp.f32 %v1154_v4  ;;  %v1157_v5 = vpop.xlane.xlu1 %1156 }
 0x4f2   :  { %5037 = vrcp.f32 %v1157_v5 }
 0x4f3   :  { %v5030_v6 = vpop.eup %5029 }
 0x4f4   :  { %v1171_v7 = vmul.f32 %v5030_v6, %v5014_v43  ;;  %v1160_v8 = vpop.xlane.xlu0 %1159  ;;  %v1905_v43 = vld [vmem:[%s6242_s2 + $0x8] sm:$0xff] }
 0x4f5   :  { %5039 = vrcp.f32 %v1160_v8  ;;  %v1710_v15 = vpop.permute.xlu1 %1709  ;;  %v4874_v45 = vpack.c.bf16 %v1905_v43, %v1904_v42 }
 0x4f6   :  { %4652 = vmatmul.mubr.msk.f32.vlgmr.msra.gmra.mrb[12].mxu0 %vm474_vm2, %v1171_v7  ;;  %v4405_v7 = vld [vmem:[#allocation14] ss:$0 sm:$0xff] }
 0x4f7   :  { %v5032_v9 = vpop.eup %5031  ;;  %4660 = vmatpush3.msra.mxu0 %v1482_v59  ;;  %4661 = vmatprep.mubr.msk.f32.mxu0 %vm5472_vm1, %v5469_v10 }
 0x4f8   :  { %v5034_v11 = vpop.eup %5033  ;;  %v1172_v20 = vmul.f32 %v5032_v9, %v5016_v47  ;;  %4669 = vmatprep.subr.mxu0 %v5469_v10  ;;  %v1634_v22 = vpop.permute.xlu0 %1633 }
 0x4f9   :  { %v1173_v21 = vmul.f32 %v5034_v11, %v5018_v48 }
 0x4fa   :  { %4657 = vmatmul.mubr.msk.f32.vlgmr.msra.gmra.mrb[10].mxu1 %vm474_vm2, %v1172_v20 }
 0x4fb   :  { %v5036_v23 = vpop.eup %5035  ;;  %4662 = vmatmul.mubr.msk.f32.vlgmr.msra.gmra.mrb[14].mxu0 %vm474_vm2, %v1173_v21  ;;  %4665 = vmatpush3.msra.mxu1 %v1558_v60 }
 0x4fc   :  { %v5038_v24 = vpop.eup %5037  ;;  %v1174_v12 = vmul.f32 %v5036_v23, %v5020_v51  ;;  %4670 = vmatpush3.msra.mxu0 %v1634_v22  ;;  %4666 = vmatprep.mubr.msk.f32.mxu1 %vm5472_vm1, %v5469_v10 }
 0x4fd   :  { %v1175_v25 = vmul.f32 %v5038_v24, %v5022_v52  ;;  %4671 = vmatprep.mubr.msk.f32.mxu0 %vm5472_vm1, %v5469_v10  ;;  %4674 = vmatprep.subr.mxu1 %v5469_v10 }
 0x4fe   :  { %4667 = vmatmul.mubr.msk.f32.vlgmr.msra.gmra.mrb[12].mxu1 %vm474_vm2, %v1174_v12  ;;  %4867 = vmatprep.subr.bf16.mxu0 %v4866_v30 }
 0x4ff   :  { %v5040_v17 = vpop.eup %5039  ;;  %4672 = vmatmul.mubr.msk.f32.vlgmr.msra.gmra.mrb[16].mxu0 %vm474_vm2, %v1175_v25  ;;  %4675 = vmatpush3.msra.mxu1 %v1710_v15 }
 0x500   :  { %v1176_v13 = vmul.f32 %v5040_v17, %v5874_v55  ;;  %4676 = vmatprep.mubr.msk.f32.mxu1 %vm5472_vm1, %v5469_v10  ;;  %4869 = vmatpush3.bf16.msra.mxu0 %v4866_v30 }
 0x501   :  { %4871 = vmatprep.subr.bf16.mxu0 %v4870_v33  ;;  %4875 = vmatprep.subr.bf16.mxu1 %v4874_v45 }
 0x502   :  { %4677 = vmatmul.mubr.msk.f32.vlgmr.msra.gmra.mrb[14].mxu1 %vm474_vm2, %v1176_v13 }
 0x503   :  { %4877 = vmatpush3.bf16.msra.mxu1 %v4874_v45 }
 0x504   :  { %4873 = vmatpush3.bf16.msra.mxu0 %v4870_v33  ;;  %4879 = vmatprep.subr.bf16.mxu1 %v4878_v2 }
 0x505   :  { %4883 = vmatprep.subr.bf16.mxu0 %v4882_v38 }
 0x507   :  { %4881 = vmatpush3.bf16.msra.mxu1 %v4878_v2  ;;  %v4414_v2 = vld [vmem:[#allocation5 + $0x6] ss:$0 sm:$0xff] }
 0x508   :  { %4708 = vmatprep.subr.mxu1 %v5469_v10 }
 0x570   :  { %v1325_v16 = vpop.f32.mrb[8].mxu1 }
 0x571   :  { %v4648_v14 = vpop.f32.mrb[9].mxu1 }
 0x574   :  { %v1249_v26 = vpop.f32.mrb[10].mxu0 }
 0x575   :  { %v4643_v27 = vpop.f32.mrb[11].mxu0 }
 0x5c9   :  { %v1401_v34 = vpop.f32.mrb[12].mxu0 }
 0x5ca   :  { %1787 = vrot.lane.b32.xlu0 %v1401_v34, %s5476_s7  ;;  %v4653_v37 = vpop.f32.mrb[13].mxu0 }
 0x5cd   :  { %v1477_v39 = vpop.f32.mrb[10].mxu1 }
 0x5ce   :  { %v1553_v40 = vpop.f32.mrb[14].mxu0  ;;  %1789 = vrot.lane.b32.xlu1 %v1477_v39, %s5476_s7  ;;  %v4658_v41 = vpop.f32.mrb[11].mxu1 }
 0x5cf   :  { %1795 = vrot.lane.b32.xlu0 %v1553_v40, %s5457_s26  ;;  %v4663_v44 = vpop.f32.mrb[15].mxu0  ;;  %v4409_v40 = vld [vmem:[#allocation5 + $0x1] ss:$0 sm:$0xff]  ;;  %v4408_v41 = vld [vmem:[#allocation5] ss:$0 sm:$0xff] }
 0x5d1   :  { %v1629_v46 = vpop.f32.mrb[12].mxu1 }
 0x5d2   :  { %v1705_v47 = vpop.f32.mrb[16].mxu0  ;;  %1797 = vrot.lane.b32.xlu1 %v1629_v46, %s5457_s26  ;;  %v4668_v48 = vpop.f32.mrb[13].mxu1  ;;  %s5478_s26 = smov 124  }
 0x5d3   :  { %1803 = vrot.lane.b32.xlu0 %v1705_v47, %s5477_s17  ;;  %v4673_v49 = vpop.f32.mrb[17].mxu0 }
 0x5d5   :  { %v1781_v50 = vpop.f32.mrb[14].mxu1 }
 0x5d6   :  { %1805 = vrot.lane.b32.xlu1 %v1781_v50, %s5477_s17  ;;  %v4678_v51 = vpop.f32.mrb[15].mxu1  ;;  %v4410_v50 = vld [vmem:[#allocation5 + $0x2] ss:$0 sm:$0xff] }
 0x63c   :  { %v1788_v52 = vpop.permute.xlu0 %1787 }
 0x63d   :  { %v1809_v55 = vsel %vm474_vm2, %v1249_v26, %v1788_v52  ;;  %v4411_v52 = vld [vmem:[#allocation5 + $0x3] ss:$0 sm:$0xff] }
 0x640   :  { %v1790_v53 = vpop.permute.xlu1 %1789 }
 0x641   :  { %v1796_v54 = vpop.permute.xlu0 %1795  ;;  %v1810_v60 = vsel %vm474_vm2, %v1325_v16, %v1790_v53 }
 0x642   :  { %v1812_v57 = vsel %vm1811_vm3, %v1809_v55, %v1796_v54 }
 0x644   :  { %v1798_v56 = vpop.permute.xlu1 %1797 }
 0x645   :  { %v1804_v58 = vpop.permute.xlu0 %1803  ;;  %v1813_v61 = vsel %vm1811_vm3, %v1810_v60, %v1798_v56 }
 0x646   :  { %v1815_v59 = vsel %vm1814_vm4, %v1812_v57, %v1804_v58  ;;  %v4412_v57 = vld [vmem:[#allocation5 + $0x4] ss:$0 sm:$0xff] }
 0x647   :  { %4687 = vmatprep.mubr.msk.f32.mxu0 %vm314_vm0, %v1815_v59 }
 0x648   :  { %v1806_v62 = vpop.permute.xlu1 %1805 }
 0x649   :  { %v1816_v0 = vsel %vm1814_vm4, %v1813_v61, %v1806_v62  ;;  %v4413_v61 = vld [vmem:[#allocation5 + $0x5] ss:$0 sm:$0xff] }
 0x64a   :  { %4688 = vmatmul.mubr.msk.f32.vlgmr.msra.gmra.mrb[18].mxu0 %vm314_vm0, %v1816_v0 }
 0x64b   :  { %4885 = vmatpush3.bf16.msra.mxu0 %v4882_v38  ;;  %4705 = vmatprep.mubr.msk.f32.mxu0 %vm1811_vm3, %v5927_v63 }
 0x64c   :  { %4713 = vmatprep.subr.mxu0 %v5469_v10 }
 0x64e   :  { %4706 = vmatmul.mubr.msk.f32.vlgmr.msra.gmra.mrb[20].mxu0 %vm1811_vm3, %v5933_v1 }
 0x64f   :  { %4715 = vmatprep.mubr.msk.f32.mxu0 %vm5472_vm1, %v5469_v10 }
 0x71d   :  { %v4689_v4 = vpop.f32.mrb[18].mxu0 }
 0x71e   :  { %v1895_v5 = vpop.f32.mrb[19].mxu0  ;;  %v1901_v8 = vadd.f32 %v4689_v4, %v4397_v3 }
 0x71f   :  { %v1896_v6 = vadd.f32 %v4397_v3, %v1895_v5 }
 0x721   :  { %4698 = vmatprep.mubr.msk.f32.mxu1 %vm314_vm0, %v1896_v6  ;;  %v4707_v9 = vpop.f32.mrb[20].mxu0 }
 0x722   :  { %v5944_v11 = vadd.f32 %v4707_v9, %v4405_v7  ;;  %4699 = vmatmul.mubr.msk.f32.vlgmr.msra.gmra.mrb[16].mxu1 %vm314_vm0, %v1901_v8  ;;  %v2135_v20 = vpop.f32.mrb[21].mxu0 }
 0x723   :  { %v5947_v21 = vadd.f32 %v4405_v7, %v2135_v20  ;;  %4710 = vmatprep.mubr.msk.f32.mxu1 %vm5472_vm1, %v5469_v10  ;;  %v4415_v7 = vld [vmem:[#allocation5 + $0x7] ss:$0 sm:$0xff] }
 0x724   :  { %2148 = vrot.lane.b32.xlu1 %v5944_v11, %s5478_s26  ;;  %v2165_v16 = vmul.f32 0.5, %v5944_v11 }
 0x725   :  { %2146 = vrot.lane.b32.xlu0 %v5947_v21, %s5478_s26  ;;  %v2164_v14 = vmul.f32 0.5, %v5947_v21 }
 0x728   :  { %2154 = vrot.lane.b32.xlu1 %v5944_v11, %s5471_s25 }
 0x729   :  { %2152 = vrot.lane.b32.xlu0 %v5947_v21, %s5471_s25  ;;  %s5483_s25 = smov [#allocation22]  }
 0x72a   :  { %s4294_s20 = sshll.u32 %s5483_s25, 4  ;;  %s4295_s20 = int_to_ptr.vmem [resolvable:$true] %s4294_s20 }
 0x72b   :  { %p5364_p13 = scmp.lt.s32.totalorder %s4295_s20, %s4295_s20 }
 0x72c   :  { %2160 = vrot.lane.b32.xlu1 %v5944_v11, %s5479_s11 }
 0x72d   :  { %2158 = vrot.lane.b32.xlu0 %v5947_v21, %s5479_s11 }
 0x730   :  { %2298 = vrot.lane.b32.xlu1 %v5944_v11, %s5470_s9 }
 0x731   :  { %2220 = vrot.lane.b32.xlu0 %v5947_v21, %s5470_s9 }
 0x796   :  { %v5963_v22 = vpop.permute.xlu1 %2148 }
 0x797   :  { %2452 = vrot.lane.b32.xlu1 %v5963_v22, %s5470_s9  ;;  %v5967_v23 = vpop.permute.xlu0 %2146  ;;  %v2167_v30 = vmul.f32 0.5, %v5963_v22 }
 0x798   :  { %2375 = vrot.lane.b32.xlu0 %v5967_v23, %s5470_s9  ;;  %v2166_v31 = vmul.f32 0.5, %v5967_v23 }
 0x79a   :  { %v5971_v24 = vpop.permute.xlu1 %2154 }
 0x79b   :  { %2606 = vrot.lane.b32.xlu1 %v5971_v24, %s5470_s9  ;;  %v5975_v12 = vpop.permute.xlu0 %2152  ;;  %v2169_v34 = vmul.f32 0.5, %v5971_v24 }
 0x79c   :  { %2529 = vrot.lane.b32.xlu0 %v5975_v12, %s5470_s9  ;;  %v2168_v35 = vmul.f32 0.5, %v5975_v12 }
 0x79e   :  { %v5979_v25 = vpop.permute.xlu1 %2160 }
 0x79f   :  { %2760 = vrot.lane.b32.xlu1 %v5979_v25, %s5470_s9  ;;  %v5983_v15 = vpop.permute.xlu0 %2158  ;;  %v2171_v38 = vmul.f32 0.5, %v5979_v25 }
 0x7a0   :  { %2683 = vrot.lane.b32.xlu0 %v5983_v15, %s5470_s9  ;;  %v2170_v39 = vmul.f32 0.5, %v5983_v15  ;;  %s6256_s9 = sld [smem:[#allocation48_spill]] }
 0x7a2   :  { %v2299_v17 = vpop.permute.xlu1 %2298 }
 0x7a3   :  { %4714 = vmatpush3.xpose.msk.msra.mxu0 %vm2222_vm5, %v2299_v17  ;;  %v2221_v13 = vpop.permute.xlu0 %2220 }
 0x7a4   :  { %4709 = vmatpush3.xpose.msk.msra.mxu1 %vm2222_vm5, %v2221_v13  ;;  %4723 = vmatprep.subr.mxu0 %v5469_v10 }
 0x7a5   :  { %4718 = vmatprep.subr.mxu1 %v5469_v10 }
 0x7a6   :  { %4716 = vmatmul.mubr.msk.f32.vlgmr.msra.gmra.mrb[22].mxu0 %vm2222_vm5, %v2165_v16 }
 0x7a7   :  { %4711 = vmatmul.mubr.msk.f32.vlgmr.msra.gmra.mrb[18].mxu1 %vm2222_vm5, %v2164_v14  ;;  %4725 = vmatprep.mubr.msk.f32.mxu0 %vm5472_vm1, %v5469_v10 }
 0x7a8   :  { %4720 = vmatprep.mubr.msk.f32.mxu1 %vm5472_vm1, %v5469_v10 }
 0x7f5   :  { %v5999_v26 = vpop.f32.mrb[16].mxu1 }
 0x7f6   :  { %v6001_v27 = vpop.f32.mrb[17].mxu1 }
 0x809   :  { %v2453_v28 = vpop.permute.xlu1 %2452 }
 0x80a   :  { %4724 = vmatpush3.xpose.msk.msra.mxu0 %vm2222_vm5, %v2453_v28  ;;  %v2376_v29 = vpop.permute.xlu0 %2375 }
 0x80b   :  { %4719 = vmatpush3.xpose.msk.msra.mxu1 %vm2222_vm5, %v2376_v29  ;;  %4733 = vmatprep.subr.mxu0 %v5469_v10 }
 0x80c   :  { %4728 = vmatprep.subr.mxu1 %v5469_v10 }
 0x80d   :  { %v2607_v32 = vpop.permute.xlu1 %2606  ;;  %4726 = vmatmul.mubr.msk.f32.vlgmr.msra.gmra.mrb[24].mxu0 %vm2222_vm5, %v2167_v30 }
 0x80e   :  { %4734 = vmatpush3.xpose.msk.msra.mxu0 %vm2222_vm5, %v2607_v32  ;;  %v2530_v33 = vpop.permute.xlu0 %2529  ;;  %4721 = vmatmul.mubr.msk.f32.vlgmr.msra.gmra.mrb[20].mxu1 %vm2222_vm5, %v2166_v31 }
 0x80f   :  { %4729 = vmatpush3.xpose.msk.msra.mxu1 %vm2222_vm5, %v2530_v33  ;;  %4735 = vmatprep.mubr.msk.f32.mxu0 %vm5472_vm1, %v5469_v10 }
 0x810   :  { %4730 = vmatprep.mubr.msk.f32.mxu1 %vm5472_vm1, %v5469_v10  ;;  %4743 = vmatprep.subr.mxu0 %v5469_v10 }
 0x811   :  { %v2761_v36 = vpop.permute.xlu1 %2760  ;;  %4736 = vmatmul.mubr.msk.f32.vlgmr.msra.gmra.mrb[26].mxu0 %vm2222_vm5, %v2169_v34  ;;  %4738 = vmatprep.subr.mxu1 %v5469_v10 }
 0x812   :  { %4744 = vmatpush3.xpose.msk.msra.mxu0 %vm2222_vm5, %v2761_v36  ;;  %v2684_v37 = vpop.permute.xlu0 %2683  ;;  %4731 = vmatmul.mubr.msk.f32.vlgmr.msra.gmra.mrb[22].mxu1 %vm2222_vm5, %v2168_v35 }
 0x813   :  { %4739 = vmatpush3.xpose.msk.msra.mxu1 %vm2222_vm5, %v2684_v37  ;;  %4745 = vmatprep.mubr.msk.f32.mxu0 %vm5472_vm1, %v5469_v10 }
 0x814   :  { %4740 = vmatprep.mubr.msk.f32.mxu1 %vm5472_vm1, %v5469_v10  ;;  %4748 = vmatprep.subr.mxu1 %v5469_v10 }
 0x815   :  { %4746 = vmatmul.mubr.msk.f32.vlgmr.msra.gmra.mrb[28].mxu0 %vm2222_vm5, %v2171_v38  ;;  %4753 = vmatprep.subr.mxu0 %v5469_v10 }
 0x816   :  { %4741 = vmatmul.mubr.msk.f32.vlgmr.msra.gmra.mrb[24].mxu1 %vm2222_vm5, %v2170_v39  ;;  %4755 = vmatprep.mubr.msk.f32.mxu0 %vm5472_vm1, %v5469_v10 }
 0x817   :  { %4750 = vmatprep.mubr.msk.f32.mxu1 %vm5472_vm1, %v5469_v10 }
 0x879   :  { %v2371_v42 = vpop.f32.mrb[22].mxu0 }
 0x87a   :  { %v2372_v43 = vadd.f32 %v4409_v40, %v2371_v42  ;;  %v2294_v44 = vpop.f32.mrb[18].mxu1  ;;  %v4717_v45 = vpop.f32.mrb[23].mxu0 }
 0x87b   :  { %v2295_v46 = vadd.f32 %v4408_v41, %v2294_v44  ;;  %v4712_v47 = vpop.f32.mrb[19].mxu1 }
 0x87c   :  { %v2840_v48 = vsel %vm474_vm2, %v2372_v43, -inf }
 0x87d   :  { %2841 = vmax.xlane.f32.xlu1 %v2840_v48  ;;  %v2837_v49 = vsel %vm474_vm2, %v2295_v46, -inf }
 0x87e   :  { %2838 = vmax.xlane.f32.xlu0 %v2837_v49 }
 0x8e0   :  { %v2525_v51 = vpop.f32.mrb[24].mxu0 }
 0x8e1   :  { %v2448_v53 = vpop.f32.mrb[20].mxu1  ;;  %v4727_v54 = vpop.f32.mrb[25].mxu0  ;;  %v2526_v58 = vadd.f32 %v4411_v52, %v2525_v51 }
 0x8e2   :  { %v2449_v55 = vadd.f32 %v4410_v50, %v2448_v53  ;;  %v4722_v56 = vpop.f32.mrb[21].mxu1 }
 0x8e3   :  { %v2846_v5 = vsel %vm474_vm2, %v2526_v58, -inf }
 0x8e4   :  { %v2679_v59 = vpop.f32.mrb[26].mxu0  ;;  %v2843_v60 = vsel %vm474_vm2, %v2449_v55, -inf }
 0x8e5   :  { %v4737_v62 = vpop.f32.mrb[27].mxu0  ;;  %2844 = vmax.xlane.f32.xlu0 %v2843_v60  ;;  %v2602_v0 = vpop.f32.mrb[22].mxu1  ;;  %v2680_v3 = vadd.f32 %v4413_v61, %v2679_v59 }
 0x8e6   :  { %v2603_v18 = vadd.f32 %v4412_v57, %v2602_v0  ;;  %v4732_v19 = vpop.f32.mrb[23].mxu1 }
 0x8e7   :  { %v2852_v16 = vsel %vm474_vm2, %v2680_v3, -inf }
 0x8e8   :  { %v2833_v4 = vpop.f32.mrb[28].mxu0  ;;  %v2849_v6 = vsel %vm474_vm2, %v2603_v18, -inf }
 0x8e9   :  { %v4747_v8 = vpop.f32.mrb[29].mxu0  ;;  %2847 = vmax.xlane.f32.xlu0 %v2846_v5  ;;  %2850 = vmax.xlane.f32.xlu1 %v2849_v6  ;;  %v2756_v9 = vpop.f32.mrb[24].mxu1  ;;  %v2834_v13 = vadd.f32 %v4415_v7, %v2833_v4 }
 0x8ea   :  { %v2757_v20 = vadd.f32 %v4414_v2, %v2756_v9  ;;  %v4742_v17 = vpop.f32.mrb[25].mxu1 }
 0x8eb   :  { %v2858_v28 = vsel %vm474_vm2, %v2834_v13, -inf }
 0x8ec   :  { %v2855_v14 = vsel %vm474_vm2, %v2757_v20, -inf }
 0x8ed   :  { %2853 = vmax.xlane.f32.xlu0 %v2852_v16  ;;  %2856 = vmax.xlane.f32.xlu1 %v2855_v14 }
 0x8f1   :  { %2859 = vmax.xlane.f32.xlu0 %v2858_v28 }
 0x8fe   :  { %2925 = vrot.lane.b32.xlu1 %v5947_v21, %s5474_s28 }
 0x902   :  { %3077 = vrot.lane.b32.xlu1 %v5967_v23, %s5474_s28 }
 0x906   :  { %3153 = vrot.lane.b32.xlu1 %v5963_v22, %s5474_s28 }
 0x907   :  { %3001 = vrot.lane.b32.xlu0 %v5944_v11, %s5474_s28 }
 0x90a   :  { %3305 = vrot.lane.b32.xlu1 %v5971_v24, %s5474_s28  ;;  %v2842_v29 = vpop.xlane.xlu1 %2841 }
 0x90b   :  { %3229 = vrot.lane.b32.xlu0 %v5975_v12, %s5474_s28  ;;  %v2862_v30 = vsub.f32 %v2372_v43, %v2842_v29  ;;  %v2839_v31 = vpop.xlane.xlu0 %2838 }
 0x90c   :  { %v2861_v21 = vsub.f32 %v2295_v46, %v2839_v31 }
 0x90d   :  { %v2871_v32 = vmul.f32 1.442695, %v2862_v30 }
 0x90e   :  { %v2869_v33 = vmul.f32 1.442695, %v2861_v21 }
 0x90f   :  { %5041 = vpow2.f32 %v2871_v32 }
 0x910   :  { %5043 = vpow2.f32 %v2869_v33 }
 0x919   :  { %v6059_v23 = vpop.eup %5041 }
 0x91a   :  { %v2888_v22 = vsel %vm474_vm2, %v6059_v23, 0.0  ;;  %v6063_v11 = vpop.eup %5043 }
 0x91b   :  { %v2885_v24 = vsel %vm474_vm2, %v6063_v11, 0.0 }
 0x92a   :  { %2889 = vadd.xlane.f32.xlu0 %v2888_v22 }
 0x92e   :  { %2886 = vadd.xlane.f32.xlu1 %v2885_v24 }
 0x972   :  { %v2845_v12 = vpop.xlane.xlu0 %2844 }
 0x973   :  { %v2863_v34 = vsub.f32 %v2449_v55, %v2845_v12 }
 0x975   :  { %v2873_v35 = vmul.f32 1.442695, %v2863_v34 }
 0x976   :  { %v2848_v36 = vpop.xlane.xlu0 %2847  ;;  %v2851_v37 = vpop.xlane.xlu1 %2850 }
 0x977   :  { %5045 = vpow2.f32 %v2873_v35  ;;  %v2864_v38 = vsub.f32 %v2526_v58, %v2848_v36  ;;  %v2865_v39 = vsub.f32 %v2603_v18, %v2851_v37 }
 0x979   :  { %v2875_v40 = vmul.f32 1.442695, %v2864_v38  ;;  %v2877_v41 = vmul.f32 1.442695, %v2865_v39 }
 0x97a   :  { %v2854_v42 = vpop.xlane.xlu0 %2853  ;;  %v2857_v43 = vpop.xlane.xlu1 %2856 }
 0x97b   :  { %5047 = vpow2.f32 %v2875_v40  ;;  %v2866_v44 = vsub.f32 %v2680_v3, %v2854_v42  ;;  %v2867_v45 = vsub.f32 %v2757_v20, %v2857_v43  ;;  %v2054_v40 = vld [vmem:[%s6244_s19] sm:$0xff] }
 0x97c   :  { %5049 = vpow2.f32 %v2877_v41  ;;  %v2055_v41 = vld [vmem:[%s6244_s19 + $0x8] sm:$0xff] }
 0x97d   :  { %v2879_v46 = vmul.f32 1.442695, %v2866_v44  ;;  %v2881_v47 = vmul.f32 1.442695, %v2867_v45  ;;  %v4886_v42 = vpack.c.bf16 %v2055_v41, %v2054_v40 }
 0x97e   :  { %v2860_v48 = vpop.xlane.xlu0 %2859  ;;  %v2926_v49 = vpop.permute.xlu1 %2925 }
 0x97f   :  { %5051 = vpow2.f32 %v2879_v46  ;;  %v2868_v50 = vsub.f32 %v2834_v13, %v2860_v48  ;;  %4749 = vmatpush3.msra.mxu1 %v2926_v49 }
 0x980   :  { %5053 = vpow2.f32 %v2881_v47  ;;  %4758 = vmatprep.subr.mxu1 %v5469_v10 }
 0x981   :  { %v5046_v51 = vpop.eup %5045  ;;  %v2883_v52 = vmul.f32 1.442695, %v2868_v50 }
 0x982   :  { %v3002_v53 = vpop.permute.xlu0 %3001  ;;  %v2891_v54 = vsel %vm474_vm2, %v5046_v51, 0.0  ;;  %v3078_v19 = vpop.permute.xlu1 %3077 }
 0x983   :  { %5055 = vpow2.f32 %v2883_v52  ;;  %4754 = vmatpush3.msra.mxu0 %v3002_v53  ;;  %2892 = vadd.xlane.f32.xlu1 %v2891_v54  ;;  %v4400_v54 = vld [vmem:[#allocation10] ss:$0 sm:$0xff] }
 0x984   :  { %4763 = vmatprep.subr.mxu0 %v5469_v10 }
 0x985   :  { %v5048_v55 = vpop.eup %5047 }
 0x986   :  { %v5050_v56 = vpop.eup %5049  ;;  %v2894_v57 = vsel %vm474_vm2, %v5048_v55, 0.0  ;;  %v3154_v2 = vpop.permute.xlu1 %3153 }
 0x987   :  { %2895 = vadd.xlane.f32.xlu0 %v2894_v57  ;;  %v2897_v58 = vsel %vm474_vm2, %v5050_v56, 0.0  ;;  %v3230_v3 = vpop.permute.xlu0 %3229 }
 0x988   :  { %2898 = vadd.xlane.f32.xlu1 %v2897_v58  ;;  %v1995_v58 = vadd.f32 %v5999_v26, %v4400_v54 }
 0x989   :  { %v5052_v59 = vpop.eup %5051 }
 0x98a   :  { %v5054_v60 = vpop.eup %5053  ;;  %v2900_v61 = vsel %vm474_vm2, %v5052_v59, 0.0  ;;  %v3306_v4 = vpop.permute.xlu1 %3305 }
 0x98b   :  { %2901 = vadd.xlane.f32.xlu0 %v2900_v61  ;;  %v2903_v62 = vsel %vm474_vm2, %v5054_v60, 0.0 }
 0x98c   :  { %2904 = vadd.xlane.f32.xlu1 %v2903_v62 }
 0x98d   :  { %v6074_v0 = vpop.eup %5055 }
 0x98e   :  { %v2906_v18 = vsel %vm474_vm2, %v6074_v0, 0.0 }
 0x98f   :  { %2907 = vadd.xlane.f32.xlu0 %v2906_v18 }
 0x99d   :  { %3457 = vrot.lane.b32.xlu1 %v5979_v25, %s5474_s28 }
 0x9a5   :  { %3381 = vrot.lane.b32.xlu0 %v5983_v15, %s5474_s28  ;;  %s5359_s28 = scalar_lea.vmem %s4295_s20, 256 }
 0x9a6   :  { %p5360_p12 = scmp.ne.s32.totalorder %s4295_s20, %s5359_s28  ;;  %p5365_p0 = scmp.lt.s32.totalorder %s5359_s28, %s5359_s28 }
 0x9a8   :  { %p5366_p1 = por %p5365_p0, %p5364_p13 }
 0x9aa   :  { %p5367_p2 = pnand %p5366_p1, %p5360_p12 }
 0x9b7   :  { %v2890_v5 = vpop.xlane.xlu0 %2889 }
 0x9b8   :  { %5057 = vrcp.f32 %v2890_v5 }
 0x9bb   :  { %v2887_v6 = vpop.xlane.xlu1 %2886 }
 0x9bc   :  { %5059 = vrcp.f32 %v2887_v6 }
 0x9c2   :  { %v5058_v7 = vpop.eup %5057 }
 0x9c3   :  { %v2918_v8 = vmul.f32 %v5058_v7, %v6059_v23 }
 0x9c5   :  { %4756 = vmatmul.mubr.msk.f32.vlgmr.msra.gmra.mrb[30].mxu0 %vm474_vm2, %v2918_v8 }
 0x9c6   :  { %v5060_v9 = vpop.eup %5059  ;;  %4764 = vmatpush3.msra.mxu0 %v3154_v2  ;;  %4765 = vmatprep.mubr.msk.f32.mxu0 %vm5472_vm1, %v5469_v10 }
 0x9c7   :  { %v2917_v25 = vmul.f32 %v5060_v9, %v6063_v11  ;;  %4773 = vmatprep.subr.mxu0 %v5469_v10 }
 0x9c9   :  { %4751 = vmatmul.mubr.msk.f32.vlgmr.msra.gmra.mrb[26].mxu1 %vm474_vm2, %v2917_v25 }
 0x9ca   :  { %4759 = vmatpush3.msra.mxu1 %v3078_v19  ;;  %4760 = vmatprep.mubr.msk.f32.mxu1 %vm5472_vm1, %v5469_v10 }
 0x9cb   :  { %4768 = vmatprep.subr.mxu1 %v5469_v10 }
 0xa10   :  { %v2893_v15 = vpop.xlane.xlu1 %2892 }
 0xa11   :  { %5061 = vrcp.f32 %v2893_v15 }
 0xa14   :  { %v2896_v20 = vpop.xlane.xlu0 %2895 }
 0xa15   :  { %5063 = vrcp.f32 %v2896_v20  ;;  %v2899_v17 = vpop.xlane.xlu1 %2898 }
 0xa16   :  { %5065 = vrcp.f32 %v2899_v17 }
 0xa18   :  { %v2902_v13 = vpop.xlane.xlu0 %2901 }
 0xa19   :  { %5067 = vrcp.f32 %v2902_v13  ;;  %v2905_v16 = vpop.xlane.xlu1 %2904  ;;  %v3651_v13 = vld [vmem:[%s6245_s21] sm:$0xff] }
 0xa1a   :  { %5069 = vrcp.f32 %v2905_v16  ;;  %v3652_v16 = vld [vmem:[%s6245_s21 + $0x8] sm:$0xff] }
 0xa1b   :  { %v5062_v14 = vpop.eup %5061 }
 0xa1c   :  { %v2919_v28 = vmul.f32 %v5062_v14, %v5046_v51  ;;  %v2908_v29 = vpop.xlane.xlu0 %2907  ;;  %v4890_v14 = vpack.c.bf16 %v3652_v16, %v3651_v13 }
 0xa1d   :  { %5071 = vrcp.f32 %v2908_v29  ;;  %v3458_v12 = vpop.permute.xlu1 %3457 }
 0xa1e   :  { %4761 = vmatmul.mubr.msk.f32.vlgmr.msra.gmra.mrb[28].mxu1 %vm474_vm2, %v2919_v28 }
 0xa1f   :  { %v5064_v30 = vpop.eup %5063  ;;  %4769 = vmatpush3.msra.mxu1 %v3230_v3  ;;  %4770 = vmatprep.mubr.msk.f32.mxu1 %vm5472_vm1, %v5469_v10 }
 0xa20   :  { %v5066_v31 = vpop.eup %5065  ;;  %v2920_v32 = vmul.f32 %v5064_v30, %v5048_v55  ;;  %4778 = vmatprep.subr.mxu1 %v5469_v10  ;;  %v3382_v33 = vpop.permute.xlu0 %3381  ;;  %v1990_v55 = vadd.f32 %v4400_v54, %v6001_v27  ;;  %v5482_v54 = vmov 0  }
 0xa21   :  { %v2921_v21 = vmul.f32 %v5066_v31, %v5050_v56  ;;  %v5093_v56 = vld [vmem:[%s5494_s5] sm:$0xff]  ;;  %5007 = vset.pattern.permute.xlu1 %v5482_v54  ;;  %5008 = vset.pattern.permute.xlu0 %v5482_v54  ;;  %v4157_v54 = vld [vmem:[%s6250_s0 + $0x30] sm:$0xff] }
 0xa22   :  { %4766 = vmatmul.mubr.msk.f32.vlgmr.msra.gmra.mrb[32].mxu0 %vm474_vm2, %v2920_v32  ;;  %v1998_v57 = vadd.f32 %v5093_v56, %v1990_v55  ;;  %v4440_v32 = vld [vmem:[#allocation16] ss:$0 sm:$0xff] }
 0xa23   :  { %v5068_v23 = vpop.eup %5067  ;;  %4771 = vmatmul.mubr.msk.f32.vlgmr.msra.gmra.mrb[30].mxu1 %vm474_vm2, %v2921_v21  ;;  %4774 = vmatpush3.msra.mxu0 %v3306_v4 }
 0xa24   :  { %v5070_v22 = vpop.eup %5069  ;;  %v2922_v11 = vmul.f32 %v5068_v23, %v5052_v59  ;;  %4779 = vmatpush3.msra.mxu1 %v3382_v33  ;;  %4775 = vmatprep.mubr.msk.f32.mxu0 %vm5472_vm1, %v5469_v10  ;;  %v2000_v59 = vsel %vm314_vm0, %v1998_v57, 0.0 }
 0xa25   :  { %v2923_v24 = vmul.f32 %v5070_v22, %v5054_v60  ;;  %4780 = vmatprep.mubr.msk.f32.mxu1 %vm5472_vm1, %v5469_v10  ;;  %4783 = vmatprep.subr.mxu0 %v5469_v10  ;;  %v5094_v60 = vld [vmem:[%s5494_s5 + $0x8] sm:$0xff]  ;;  %s6246_s5 = sld [smem:[#allocation41_spill]] }
 0xa26   :  { %4776 = vmatmul.mubr.msk.f32.vlgmr.msra.gmra.mrb[34].mxu0 %vm474_vm2, %v2922_v11  ;;  %4887 = vmatprep.subr.bf16.mxu1 %v4886_v42  ;;  %v1999_v61 = vadd.f32 %v5094_v60, %v1995_v58 }
 0xa27   :  { %v5072_v34 = vpop.eup %5071  ;;  %4781 = vmatmul.mubr.msk.f32.vlgmr.msra.gmra.mrb[32].mxu1 %vm474_vm2, %v2923_v24  ;;  %4784 = vmatpush3.msra.mxu0 %v3458_v12  ;;  %v4403_v24 = vld [vmem:[#allocation11] ss:$0 sm:$0xff] }
 0xa28   :  { %v2924_v35 = vmul.f32 %v5072_v34, %v6074_v0  ;;  %4785 = vmatprep.mubr.msk.f32.mxu0 %vm5472_vm1, %v5469_v10  ;;  %4889 = vmatpush3.bf16.msra.mxu1 %v4886_v42  ;;  %v2003_v62 = vsel %vm314_vm0, %v1999_v61, 0.0  ;;  %v4404_v34 = vld [vmem:[#allocation13] ss:$0 sm:$0xff] }
 0xa29   :  { %4891 = vmatprep.subr.bf16.mxu0 %v4890_v14 }
 0xa2a   :  { %4786 = vmatmul.mubr.msk.f32.vlgmr.msra.gmra.mrb[36].mxu0 %vm474_vm2, %v2924_v35 }
 0xa2b   :  { %4893 = vmatpush3.bf16.msra.mxu0 %v4890_v14 }
 0xa98   :  { %v3073_v36 = vpop.f32.mrb[30].mxu0 }
 0xa99   :  { %v4757_v37 = vpop.f32.mrb[31].mxu0 }
 0xa9a   :  { %v4443_v37 = vld [vmem:[#allocation17] ss:$0 sm:$0xff] }
 0xa9c   :  { %v2997_v38 = vpop.f32.mrb[26].mxu1 }
 0xa9d   :  { %v4752_v39 = vpop.f32.mrb[27].mxu1 }
 0xaf1   :  { %v3149_v43 = vpop.f32.mrb[28].mxu1 }
 0xaf2   :  { %3535 = vrot.lane.b32.xlu0 %v3149_v43, %s5480_s12  ;;  %v4762_v44 = vpop.f32.mrb[29].mxu1 }
 0xaf5   :  { %v3225_v45 = vpop.f32.mrb[32].mxu0 }
 0xaf6   :  { %v3301_v46 = vpop.f32.mrb[30].mxu1  ;;  %3537 = vrot.lane.b32.xlu1 %v3225_v45, %s5480_s12  ;;  %v4767_v10 = vpop.f32.mrb[33].mxu0 }
 0xaf7   :  { %3543 = vrot.lane.b32.xlu0 %v3301_v46, %s5476_s7  ;;  %v4772_v47 = vpop.f32.mrb[31].mxu1 }
 0xaf9   :  { %v3377_v48 = vpop.f32.mrb[34].mxu0 }
 0xafa   :  { %v3453_v49 = vpop.f32.mrb[32].mxu1  ;;  %3545 = vrot.lane.b32.xlu1 %v3377_v48, %s5476_s7  ;;  %v4777_v50 = vpop.f32.mrb[35].mxu0 }
 0xafb   :  { %3551 = vrot.lane.b32.xlu0 %v3453_v49, %s5481_s15  ;;  %v4782_v51 = vpop.f32.mrb[33].mxu1  ;;  %v3802_v49 = vld [vmem:[%s6246_s5] sm:$0xff]  ;;  %v3803_v50 = vld [vmem:[%s6246_s5 + $0x8] sm:$0xff] }
 0xafc   :  { %v4894_v51 = vpack.c.bf16 %v3803_v50, %v3802_v49  ;;  %v4155_v49 = vld [vmem:[%s6250_s0 + $0x20] sm:$0xff]  ;;  %v4156_v50 = vld [vmem:[%s6250_s0 + $0x28] sm:$0xff] }
 0xafd   :  { %v3529_v52 = vpop.f32.mrb[36].mxu0 }
 0xafe   :  { %3553 = vrot.lane.b32.xlu1 %v3529_v52, %s5481_s15  ;;  %v4787_v53 = vpop.f32.mrb[37].mxu0  ;;  %4895 = vmatprep.subr.bf16.mxu1 %v4894_v51  ;;  %v3804_v52 = vld [vmem:[%s6246_s5 + $0x10] sm:$0xff] }
 0xaff   :  { %v3805_v53 = vld [vmem:[%s6246_s5 + $0x18] sm:$0xff] }
 0xb1a   :  { %2001 = vadd.xlane.f32.xlu0 %v2000_v59 }
 0xb22   :  { %2004 = vadd.xlane.f32.xlu1 %v2003_v62 }
 0xb64   :  { %v3536_v0 = vpop.permute.xlu0 %3535 }
 0xb65   :  { %v3557_v2 = vsel %vm2222_vm5, %v2997_v38, %v3536_v0 }
 0xb68   :  { %v3538_v18 = vpop.permute.xlu1 %3537 }
 0xb69   :  { %v3544_v19 = vpop.permute.xlu0 %3543  ;;  %v3558_v5 = vsel %vm2222_vm5, %v3073_v36, %v3538_v18 }
 0xb6a   :  { %v3559_v27 = vsel %vm474_vm2, %v3557_v2, %v3544_v19 }
 0xb6c   :  { %v3546_v3 = vpop.permute.xlu1 %3545 }
 0xb6d   :  { %v3552_v26 = vpop.permute.xlu0 %3551  ;;  %v3560_v6 = vsel %vm474_vm2, %v3558_v5, %v3546_v3  ;;  %v3788_v3 = vld [vmem:[%s6247_s30] sm:$0xff] }
 0xb6e   :  { %v3562_v4 = vsel %vm3561_vm6, %v3559_v27, %v3552_v26 }
 0xb6f   :  { %4792 = vmatprep.mubr.msk.f32.mxu1 %vm1811_vm3, %v3562_v4 }
 0xb70   :  { %v3554_v7 = vpop.permute.xlu1 %3553 }
 0xb71   :  { %v3563_v8 = vsel %vm3561_vm6, %v3560_v6, %v3554_v7  ;;  %v3894_v6 = vld [vmem:[%s6248_s16] sm:$0xff]  ;;  %v3895_v7 = vld [vmem:[%s6248_s16 + $0x8] sm:$0xff] }
 0xb72   :  { %4793 = vmatmul.mubr.msk.f32.vlgmr.msra.gmra.mrb[34].mxu1 %vm1811_vm3, %v3563_v8  ;;  %v3789_v8 = vld [vmem:[%s6247_s30 + $0x8] sm:$0xff] }
 0xb73   :  { %4897 = vmatpush3.bf16.msra.mxu1 %v4894_v51 }
 0xba7   :  { %v2002_v9 = vpop.xlane.xlu0 %2001 }
 0xba8   :  { %v2007_v25 = vmul.f32 0.03125, %v2002_v9  ;;  %v4902_v9 = vpack.c.bf16 %v3895_v7, %v3894_v6 }
 0xbaa   :  { %v2009_v15 = vsub.f32 %v1998_v57, %v2007_v25 }
 0xbac   :  { %v2011_v20 = vmul.f32 %v2009_v15, %v2009_v15 }
 0xbae   :  { %v2013_v17 = vsel %vm314_vm0, %v2011_v20, 0.0 }
 0xbaf   :  { %2014 = vadd.xlane.f32.xlu1 %v2013_v17  ;;  %v2005_v28 = vpop.xlane.xlu1 %2004 }
 0xbb0   :  { %v2008_v40 = vmul.f32 0.03125, %v2005_v28  ;;  %v4446_v28 = vld [vmem:[#allocation19] ss:$0 sm:$0xff] }
 0xbb2   :  { %v2010_v44 = vsub.f32 %v1999_v61, %v2008_v40  ;;  %v4152_v40 = vld [vmem:[%s6250_s0 + $0x8] sm:$0xff] }
 0xbb4   :  { %v2012_v47 = vmul.f32 %v2010_v44, %v2010_v44 }
 0xbb6   :  { %v2016_v48 = vsel %vm314_vm0, %v2012_v47, 0.0 }
 0xc3c   :  { %v2015_v29 = vpop.xlane.xlu1 %2014 }
 0xc3d   :  { %v2019_v30 = vmul.f32 0.03125, %v2015_v29 }
 0xc3f   :  { %v2021_v31 = vadd.f32 1e-05, %v2019_v30  ;;  %v4447_v30 = vld [vmem:[#allocation20] ss:$0 sm:$0xff] }
 0xc41   :  { %5073 = vrsqrt.f32 %v2021_v31 }
 0xc45   :  { %v4794_v21 = vpop.f32.mrb[34].mxu1 }
 0xc46   :  { %v3642_v33 = vpop.f32.mrb[35].mxu1  ;;  %v3648_v22 = vadd.f32 %v4794_v21, %v4440_v32 }
 0xc47   :  { %v3643_v23 = vadd.f32 %v4440_v32, %v3642_v33 }
 0xc49   :  { %4799 = vmatprep.mubr.msk.f32.mxu0 %vm1811_vm3, %v3643_v23 }
 0xc4a   :  { %4800 = vmatmul.mubr.msk.f32.vlgmr.msra.gmra.mrb[38].mxu0 %vm1811_vm3, %v3648_v22 }
 0xc4b   :  { %v5074_v11 = vpop.eup %5073 }
 0xc4c   :  { %v2025_v12 = vmul.f32 %v5074_v11, %v2009_v15 }
 0xc4e   :  { %v2033_v35 = vmul.f32 %v4403_v24, %v2025_v12 }
 0xc50   :  { %v6130_v36 = vadd.f32 %v4404_v34, %v2033_v35  ;;  %v4006_v35 = vld [vmem:[%s6249_s18] sm:$0xff] }
 0xc52   :  { %4810 = vmatprep.mubr.msk.f32.mxu1 %vm314_vm0, %v6130_v36 }
 0xd1d   :  { %v4801_v38 = vpop.f32.mrb[38].mxu0 }
 0xd1e   :  { %v3734_v39 = vpop.f32.mrb[39].mxu0  ;;  %v3740_v41 = vadd.f32 %v4801_v38, %v4443_v37  ;;  %v4151_v38 = vld [vmem:[%s6250_s0] sm:$0xff] }
 0xd1f   :  { %v3735_v42 = vadd.f32 %v4443_v37, %v3734_v39  ;;  %v4007_v37 = vld [vmem:[%s6249_s18 + $0x8] sm:$0xff] }
 0xd20   :  { %v3744_v46 = vadd.f32 %v3740_v41, %v5933_v1  ;;  %v4906_v39 = vpack.c.bf16 %v4007_v37, %v4006_v35  ;;  %v4008_v41 = vld [vmem:[%s6249_s18 + $0x10] sm:$0xff] }
 0xd21   :  { %v3743_v43 = vadd.f32 %v3735_v42, %v5927_v63  ;;  %v4898_v63 = vpack.c.bf16 %v3805_v53, %v3804_v52  ;;  %v4009_v42 = vld [vmem:[%s6249_s18 + $0x18] sm:$0xff]  ;;  %v4930_v52 = vpack.c.bf16 %v4156_v50, %v4155_v49  ;;  %v4012_v53 = vld [vmem:[%s6249_s18 + $0x30] sm:$0xff] }
 0xd22   :  { %v3748_v10 = vsel %vm1811_vm3, %v3744_v46, 0.0  ;;  %4907 = vmatprep.subr.bf16.mxu0 %v4906_v39 }
 0xd23   :  { %v3745_v45 = vsel %vm1811_vm3, %v3743_v43, 0.0  ;;  %4899 = vmatprep.subr.bf16.mxu1 %v4898_v63  ;;  %4909 = vmatpush3.bf16.msra.mxu0 %v4906_v39 }
 0xd24   :  { %3746 = vadd.xlane.f32.xlu0 %v3745_v45  ;;  %4901 = vmatpush3.bf16.msra.mxu1 %v4898_v63  ;;  %v4153_v45 = vld [vmem:[%s6250_s0 + $0x10] sm:$0xff]  ;;  %v4013_v63 = vld [vmem:[%s6249_s18 + $0x38] sm:$0xff] }
 0xd25   :  { %4903 = vmatprep.subr.bf16.mxu1 %v4902_v9 }
 0xd28   :  { %3749 = vadd.xlane.f32.xlu0 %v3748_v10  ;;  %v4010_v10 = vld [vmem:[%s6249_s18 + $0x20] sm:$0xff] }
 0xd2c   :  { %2017 = vadd.xlane.f32.xlu0 %v2016_v48  ;;  %v4011_v48 = vld [vmem:[%s6249_s18 + $0x28] sm:$0xff] }
 0xd2d   :  { %v4914_v51 = vpack.c.bf16 %v4011_v48, %v4010_v10 }
 0xdb1   :  { %v3747_v1 = vpop.xlane.xlu0 %3746 }
 0xdb2   :  { %v3752_v55 = vmul.f32 0.0625, %v3747_v1  ;;  %v4158_v1 = vld [vmem:[%s6250_s0 + $0x38] sm:$0xff] }
 0xdb4   :  { %v3754_v56 = vsub.f32 %v3743_v43, %v3752_v55  ;;  %v4922_v43 = vpack.c.bf16 %v4152_v40, %v4151_v38  ;;  %v4918_v55 = vpack.c.bf16 %v4013_v63, %v4012_v53 }
 0xdb5   :  { %v3750_v57 = vpop.xlane.xlu0 %3749 }
 0xdb6   :  { %v3753_v58 = vmul.f32 0.0625, %v3750_v57  ;;  %v3756_v59 = vmul.f32 %v3754_v56, %v3754_v56  ;;  %v4448_v57 = vld [vmem:[%s6251_s8] ss:$0 sm:$0xff] }
 0xdb8   :  { %v3755_v60 = vsub.f32 %v3744_v46, %v3753_v58  ;;  %v3758_v61 = vsel %vm1811_vm3, %v3756_v59, 0.0  ;;  %v4154_v46 = vld [vmem:[%s6250_s0 + $0x18] sm:$0xff]  ;;  %v4453_v59 = vld [vmem:[%s6252_s22] ss:$0 sm:$0xff] }
 0xdb9   :  { %3759 = vadd.xlane.f32.xlu1 %v3758_v61  ;;  %v2018_v62 = vpop.xlane.xlu0 %2017  ;;  %v4926_v47 = vpack.c.bf16 %v4154_v46, %v4153_v45 }
 0xdba   :  { %v2020_v0 = vmul.f32 0.03125, %v2018_v62  ;;  %v3757_v18 = vmul.f32 %v3755_v60, %v3755_v60 }
 0xdbc   :  { %v2022_v19 = vadd.f32 1e-05, %v2020_v0  ;;  %v3761_v2 = vsel %vm1811_vm3, %v3757_v18, 0.0 }
 0xdbd   :  { %3762 = vadd.xlane.f32.xlu0 %v3761_v2 }
 0xdbe   :  { %5075 = vrsqrt.f32 %v2022_v19 }
 0xdc8   :  { %v5076_v27 = vpop.eup %5075 }
 0xdc9   :  { %v2026_v26 = vmul.f32 %v5076_v27, %v2010_v44  ;;  %v4910_v44 = vpack.c.bf16 %v4009_v42, %v4008_v41 }
 0xdca   :  { %3792 = vperm.xlu1 %5007, %v3788_v3  }
 0xdcb   :  { %v2034_v4 = vmul.f32 %v4403_v24, %v2026_v26  ;;  %4911 = vmatprep.subr.bf16.mxu0 %v4910_v44 }
 0xdcc   :  { %4913 = vmatpush3.bf16.msra.mxu0 %v4910_v44 }
 0xdcd   :  { %v6146_v5 = vadd.f32 %v4404_v34, %v2034_v4  ;;  %4915 = vmatprep.subr.bf16.mxu0 %v4914_v51 }
 0xdcf   :  { %4811 = vmatmul.mubr.msk.f32.vlgmr.msra.gmra.mrb[36].mxu1 %vm314_vm0, %v6146_v5 }
 0xdd0   :  { %4905 = vmatpush3.bf16.msra.mxu1 %v4902_v9  ;;  %4917 = vmatpush3.bf16.msra.mxu0 %v4914_v51 }
 0xdd1   :  { %4923 = vmatprep.subr.bf16.mxu1 %v4922_v43  ;;  %4919 = vmatprep.subr.bf16.mxu0 %v4918_v55 }
 0xdd3   :  { %3797 = vperm.xlu0 %5008, %v3789_v8  }
 0xdd4   :  { %4921 = vmatpush3.bf16.msra.mxu0 %v4918_v55 }
 0xe46   :  { %v3760_v25 = vpop.xlane.xlu1 %3759 }
 0xe47   :  { %v3764_v15 = vmul.f32 0.0625, %v3760_v25 }
 0xe49   :  { %v3766_v20 = vadd.f32 1e-05, %v3764_v15 }
 0xe4a   :  { %v3763_v17 = vpop.xlane.xlu0 %3762  ;;  %v3793_v21 = vpop.permute.xlu1 %3792 }
 0xe4b   :  { %5077 = vrsqrt.f32 %v3766_v20  ;;  %v3765_v13 = vmul.f32 0.0625, %v3763_v17 }
 0xe4d   :  { %v3767_v16 = vadd.f32 1e-05, %v3765_v13 }
 0xe4f   :  { %5079 = vrsqrt.f32 %v3767_v16 }
 0xe52   :  { %v3798_v24 = vpop.permute.xlu0 %3797 }
 0xe55   :  { %v5078_v14 = vpop.eup %5077 }
 0xe56   :  { %v3770_v29 = vmul.f32 %v5078_v14, %v3754_v56  ;;  %v4934_v56 = vpack.c.bf16 %v4158_v1, %v4157_v54 }
 0xe58   :  { %v3778_v31 = vmul.f32 %v4446_v28, %v3770_v29  ;;  %v4454_v29 = vld [vmem:[%s6253_s27] ss:$0 sm:$0xff] }
 0xe59   :  { %v5080_v32 = vpop.eup %5079 }
 0xe5a   :  { %v3786_v33 = vadd.f32 %v4447_v30, %v3778_v31  ;;  %v3771_v23 = vmul.f32 %v5080_v32, %v3755_v60 }
 0xe5c   :  { %v6153_v22 = vmul.f32 %v3793_v21, %v3786_v33  ;;  %v3779_v11 = vmul.f32 %v4446_v28, %v3771_v23 }
 0xe5e   :  { %4817 = vmatprep.mubr.msk.f32.mxu1 %vm1811_vm3, %v6153_v22  ;;  %v3787_v12 = vadd.f32 %v4447_v30, %v3779_v11  ;;  %v4459_v30 = vld [vmem:[%s6254_s23] ss:$0 sm:$0xff] }
 0xe60   :  { %v6157_v34 = vmul.f32 %v3798_v24, %v3787_v12 }
 0xe62   :  { %4818 = vmatmul.mubr.msk.f32.vlgmr.msra.gmra.mrb[36].mxu1 %vm1811_vm3, %v6157_v34 }
 0xe63   :  { %4925 = vmatpush3.bf16.msra.mxu1 %v4922_v43 }
 0xe64   :  { %4927 = vmatprep.subr.bf16.mxu1 %v4926_v47 }
 0xe67   :  { %4929 = vmatpush3.bf16.msra.mxu1 %v4926_v47 }
 0xe68   :  { %4931 = vmatprep.subr.bf16.mxu1 %v4930_v52 }
 0xe6b   :  { %4933 = vmatpush3.bf16.msra.mxu1 %v4930_v52 }
 0xe6c   :  { %4935 = vmatprep.subr.bf16.mxu1 %v4934_v56 }
 0xe6f   :  { %4937 = vmatpush3.bf16.msra.mxu1 %v4934_v56 }
 0xf35   :  { %v4819_v58 = vpop.f32.mrb[36].mxu1 }
 0xf36   :  { %v4938_v60 = vadd.f32 %v4819_v58, %v4448_v57  ;;  %v3968_v61 = vpop.f32.mrb[37].mxu1 }
 0xf37   :  { %v4939_v62 = vadd.f32 %v4448_v57, %v3968_v61 }
 0xf38   :  { %v3987_v0 = vadd.f32 %v4938_v60, %v4453_v59 }
 0xf39   :  { %v3986_v18 = vadd.f32 %v4939_v62, %v4453_v59 }
 0xf3a   :  { %v3991_v19 = vmul.f32 0.044715, %v3987_v0  ;;  %v3989_v16 = vmul.f32 0.5, %v3987_v0 }
 0xf3b   :  { %v3990_v2 = vmul.f32 0.044715, %v3986_v18  ;;  %v3988_v17 = vmul.f32 0.5, %v3986_v18 }
 0xf3c   :  { %v3993_v3 = vmul.f32 %v3991_v19, %v3987_v0 }
 0xf3d   :  { %v3992_v27 = vmul.f32 %v3990_v2, %v3986_v18 }
 0xf3e   :  { %v3995_v26 = vmul.f32 %v3993_v3, %v3987_v0 }
 0xf3f   :  { %v3994_v4 = vmul.f32 %v3992_v27, %v3986_v18 }
 0xf40   :  { %v3997_v6 = vadd.f32 %v3995_v26, %v3987_v0  ;;  %v4457_v26 = vld [vmem:[%s6255_s13] ss:$0 sm:$0xff] }
 0xf41   :  { %v3996_v7 = vadd.f32 %v3994_v4, %v3986_v18 }
 0xf42   :  { %v3999_v8 = vmul.f32 0.7978846, %v3997_v6 }
 0xf43   :  { %v3998_v9 = vmul.f32 0.7978846, %v3996_v7  ;;  %v4458_v7 = vld [vmem:[%s6256_s9] ss:$0 sm:$0xff] }
 0xf44   :  { %5081 = vtanh.f32 %v3999_v8 }
 0xf45   :  { %5083 = vtanh.f32 %v3998_v9 }
 0xf4e   :  { %v5082_v25 = vpop.eup %5081 }
 0xf4f   :  { %v5084_v15 = vpop.eup %5083  ;;  %v4003_v20 = vadd.f32 1.0, %v5082_v25 }
 0xf50   :  { %v4002_v13 = vadd.f32 1.0, %v5084_v15 }
 0xf51   :  { %v4005_v28 = vmul.f32 %v4003_v20, %v3989_v16 }
 0xf52   :  { %v4004_v14 = vmul.f32 %v4002_v13, %v3988_v17  ;;  %v4462_v13 = vld [vmem:[%s5649_s6] ss:$0 sm:$0xff] }
 0xf54   :  { %4836 = vmatprep.mubr.msk.f32.mxu0 %vm4023_vm7, %v4004_v14  ;;  %4855 = vmatprep.mubr.msk.f32.mxu1 %vm4023_vm7, %v4004_v14 }
 0xf55   :  { %4837 = vmatmul.mubr.msk.f32.vlgmr.msra.gmra.mrb[40].mxu0 %vm4023_vm7, %v4005_v28  ;;  %4856 = vmatmul.mubr.msk.f32.vlgmr.msra.gmra.mrb[38].mxu1 %vm4023_vm7, %v4005_v28  ;;  %v4463_v28 = vld [vmem:[%s5654_s3] ss:$0 sm:$0xff] }
0x1028   :  { %v4838_v31 = vpop.f32.mrb[40].mxu0  ;;  %v4857_v32 = vpop.f32.mrb[38].mxu1 }
0x1029   :  { %v4102_v21 = vadd.f32 %v4838_v31, %v4454_v29  ;;  %v4096_v33 = vpop.f32.mrb[41].mxu0  ;;  %v4234_v23 = vpop.f32.mrb[39].mxu1  ;;  %v4240_v38 = vadd.f32 %v4857_v32, %v4459_v30 }
0x102a   :  { %v4097_v11 = vadd.f32 %v4454_v29, %v4096_v33  ;;  %v4235_v24 = vadd.f32 %v4459_v30, %v4234_v23 }
0x102b   :  { %v4106_v12 = vadd.f32 %v4102_v21, %v6146_v5  ;;  %v4244_v41 = vadd.f32 %v4240_v38, %v6157_v34 }
0x102c   :  { %v4105_v35 = vadd.f32 %v4097_v11, %v6130_v36  ;;  %v4243_v39 = vadd.f32 %v4235_v24, %v6153_v22 }
0x102d   :  { %v4110_v37 = vsel %vm314_vm0, %v4106_v12, 0.0  ;;  %v4248_v43 = vsel %vm1811_vm3, %v4244_v41, 0.0 }
0x102e   :  { %4111 = vadd.xlane.f32.xlu0 %v4110_v37  ;;  %v4107_v40 = vsel %vm314_vm0, %v4105_v35, 0.0  ;;  %v4245_v42 = vsel %vm1811_vm3, %v4243_v39, 0.0 }
0x102f   :  { %4108 = vadd.xlane.f32.xlu1 %v4107_v40 }
0x1033   :  { %4246 = vadd.xlane.f32.xlu1 %v4245_v42 }
0x1037   :  { %4249 = vadd.xlane.f32.xlu1 %v4248_v43 }
0x10bb   :  { %v4112_v5 = vpop.xlane.xlu0 %4111 }
0x10bc   :  { %v4114_v44 = vmul.f32 0.03125, %v4112_v5  ;;  %v4109_v36 = vpop.xlane.xlu1 %4108 }
0x10bd   :  { %v4113_v45 = vmul.f32 0.03125, %v4109_v36 }
0x10be   :  { %v4116_v46 = vsub.f32 %v4106_v12, %v4114_v44 }
0x10bf   :  { %v4115_v10 = vsub.f32 %v4105_v35, %v4113_v45 }
0x10c0   :  { %v4247_v47 = vpop.xlane.xlu1 %4246  ;;  %v4118_v22 = vmul.f32 %v4116_v46, %v4116_v46 }
0x10c1   :  { %v4251_v48 = vmul.f32 0.0625, %v4247_v47  ;;  %v4117_v50 = vmul.f32 %v4115_v10, %v4115_v10 }
0x10c2   :  { %v4122_v49 = vsel %vm314_vm0, %v4118_v22, 0.0 }
0x10c3   :  { %v4253_v51 = vsub.f32 %v4243_v39, %v4251_v48  ;;  %4123 = vadd.xlane.f32.xlu1 %v4122_v49  ;;  %v4119_v53 = vsel %vm314_vm0, %v4117_v50, 0.0 }
0x10c4   :  { %v4250_v34 = vpop.xlane.xlu1 %4249 }
0x10c5   :  { %v4252_v52 = vmul.f32 0.0625, %v4250_v34  ;;  %v4255_v63 = vmul.f32 %v4253_v51, %v4253_v51 }
0x10c7   :  { %v4254_v54 = vsub.f32 %v4244_v41, %v4252_v52  ;;  %4120 = vadd.xlane.f32.xlu1 %v4119_v53  ;;  %v4257_v1 = vsel %vm1811_vm3, %v4255_v63, 0.0 }
0x10c9   :  { %v4256_v55 = vmul.f32 %v4254_v54, %v4254_v54 }
0x10cb   :  { %4258 = vadd.xlane.f32.xlu1 %v4257_v1  ;;  %v4260_v56 = vsel %vm1811_vm3, %v4256_v55, 0.0 }
0x10cf   :  { %4261 = vadd.xlane.f32.xlu1 %v4260_v56 }
0x1150   :  { %v4124_v57 = vpop.xlane.xlu1 %4123 }
0x1151   :  { %v4126_v58 = vmul.f32 0.03125, %v4124_v57 }
0x1153   :  { %v4128_v59 = vadd.f32 1e-05, %v4126_v58 }
0x1154   :  { %v4121_v60 = vpop.xlane.xlu1 %4120 }
0x1155   :  { %5085 = vrsqrt.f32 %v4128_v59  ;;  %v4125_v61 = vmul.f32 0.03125, %v4121_v60 }
0x1157   :  { %v4127_v62 = vadd.f32 1e-05, %v4125_v61 }
0x1158   :  { %v4259_v0 = vpop.xlane.xlu1 %4258 }
0x1159   :  { %5087 = vrsqrt.f32 %v4127_v62  ;;  %v4263_v18 = vmul.f32 0.0625, %v4259_v0 }
0x115b   :  { %v4265_v19 = vadd.f32 1e-05, %v4263_v18 }
0x115c   :  { %v4262_v2 = vpop.xlane.xlu1 %4261 }
0x115d   :  { %5089 = vrsqrt.f32 %v4265_v19  ;;  %v4264_v3 = vmul.f32 0.0625, %v4262_v2 }
0x115f   :  { %v5086_v27 = vpop.eup %5085  ;;  %v4266_v4 = vadd.f32 1e-05, %v4264_v3 }
0x1160   :  { %v4132_v6 = vmul.f32 %v5086_v27, %v4116_v46 }
0x1161   :  { %5091 = vrsqrt.f32 %v4266_v4 }
0x1162   :  { %v4140_v8 = vmul.f32 %v4457_v26, %v4132_v6 }
0x1163   :  { %v5088_v9 = vpop.eup %5087 }
0x1164   :  { %v4131_v25 = vmul.f32 %v5088_v9, %v4115_v10  ;;  %v4148_v15 = vadd.f32 %v4458_v7, %v4140_v8 }
0x1166   :  { %v4139_v20 = vmul.f32 %v4457_v26, %v4131_v25  ;;  %4150 = vst.msk [vmem:[#allocation22 + $0x8] sm:$0xff] %vm314_vm0, %v4148_v15 }
0x1167   :  { %v5090_v17 = vpop.eup %5089 }
0x1168   :  { %v4269_v16 = vmul.f32 %v5090_v17, %v4253_v51  ;;  %v4147_v14 = vadd.f32 %v4458_v7, %v4139_v20 }
0x116a   :  { %v4277_v29 = vmul.f32 %v4462_v13, %v4269_v16  ;;  %4149 = vst.msk [vmem:[#allocation22] sm:$0xff] %vm314_vm0, %v4147_v14 }
0x116b   :  { %v5092_v30 = vpop.eup %5091 }
0x116c   :  { %5370 = shalt.err (!%p5367_p2)
}
0x116d   :  { %s5371_s1 = scalar_lea.hbm %s5659_s4, 256 }
0x116e   :  { %p5372_p3 = scmp.ne.s32.totalorder %s5659_s4, %s5371_s1  ;;  %p5375_p4 = scmp.lt.u32.totalorder %s5371_s1, %s5659_s4 }
0x1170   :  { %p5377_p5 = pnand %p5375_p4, %p5372_p3 }
0x1172   :  { %5380 = shalt.err (!%p5377_p5)
}
0x1173   :  { %s5484_s3 = smov 128   ;;  %v4270_v31 = vmul.f32 %v5092_v30, %v4254_v54  ;;  %v4285_v32 = vadd.f32 %v4463_v28, %v4277_v29  ;;  %s5485_s6 = smov [#allocation23]  }
0x1174   :  { %4300 = dma.vmem_to_hbm [thread:$0]  %s4295_s20, 256, %s5659_s4, [#allocation4], %s5484_s3, %s5484_s3, %s5476_s7  }
0x1175   :  { %s4306_s24 = sshll.u32 %s5485_s6, 4  ;;  %v4278_v21 = vmul.f32 %v4462_v13, %v4270_v31  ;;  %4287 = vst.msk [vmem:[#allocation23] sm:$0xff] %vm1811_vm3, %v4285_v32  ;;  %s4307_s24 = int_to_ptr.vmem [resolvable:$true] %s4306_s24 }
0x1176   :  { %s5381_s29 = scalar_lea.vmem %s4307_s24, 256  ;;  %p5386_p7 = scmp.lt.s32.totalorder %s4307_s24, %s4307_s24 }
0x1177   :  { %v4286_v33 = vadd.f32 %v4463_v28, %v4278_v21  ;;  %p5382_p6 = scmp.ne.s32.totalorder %s4307_s24, %s5381_s29  ;;  %p5387_p8 = scmp.lt.s32.totalorder %s5381_s29, %s5381_s29 }
0x1179   :  { %4288 = vst.msk [vmem:[#allocation23 + $0x8] sm:$0xff] %vm1811_vm3, %v4286_v33  ;;  %p5388_p9 = por %p5387_p8, %p5386_p7 }
0x117b   :  { %p5389_p10 = pnand %p5388_p9, %p5382_p6 }
0x117d   :  { %5392 = shalt.err (!%p5389_p10)
}
0x117e   :  { %s5393_s4 = scalar_lea.hbm %s5664_s14, 256 }
0x117f   :  { %p5394_p11 = scmp.ne.s32.totalorder %s5664_s14, %s5393_s4  ;;  %p5397_p12 = scmp.lt.u32.totalorder %s5393_s4, %s5664_s14 }
0x1181   :  { %p5399_p13 = pnand %p5397_p12, %p5394_p11 }
0x1183   :  { %5402 = shalt.err (!%p5399_p13)
}
0x1184   :  { %4312 = dma.vmem_to_hbm [thread:$0]  %s4307_s24, 256, %s5664_s14, [#allocation24], %s5484_s3, %s5484_s3, %s5476_s7  }
0x1185   :  { %5417 = dma.done.wait [#allocation4], 256  }
0x1186   :  { %5418 = vsyncadd [#allocation4], 4294967040 }
0x1187   :  { %5419 = dma.done.wait [#allocation24], 256  }
0x1188   :  { %5420 = vsyncadd [#allocation24], 4294967040 }
0x1189   :  { %4319 = vsyncpa [#allocation3], 1 }
0x118a   :  { %4320 = vsyncpa [#allocation6], 1 }
0x118b   :  { %4321 = vsyncpa [#allocation9], 1 }
0x118c   :  { %4322 = vsyncpa [#allocation12], 1 }
0x118d   :  { %4323 = vsyncpa [#allocation15], 1 }
0x118e   :  { %4324 = vsyncpa [#allocation18], 1 }
0x118f   :  { %4325 = vsyncpa [#allocation21], 1 }
0x1190   :  { %4326 = vsyncpa [#allocation4], 1 }
0x1191   :  { %4327 = vsyncpa [#allocation24], 1 }

</bundles_post_ra>
